<compile_context>
chip_gen: v7x
topology: tpu7x:2x2x1
jax: 0.10.0
libtpu: 0.0.40
codegen_flags: <defaults>
</compile_context>

<pallas_src>
import math
from functools import partial

import jax
import jax.numpy as jnp
from jax import lax
from jax.experimental import pallas as pl
from jax.experimental.pallas import tpu as pltpu

_MXU_DTYPE = jnp.bfloat16


def _default_vmem_limit():
    """Generation-aware scoped-VMEM request (v7x only has 64 MiB physical)."""
    try:
        cap = int(pltpu.get_tpu_info().vmem_capacity_bytes)
    except Exception:
        cap = 64 * 1024 * 1024
    return int(min(cap * 3 // 4, 96 * 1024 * 1024))


_VMEM_LIMIT = _default_vmem_limit()


# --------------------------------------------------------------------------------------
# helpers
# --------------------------------------------------------------------------------------
def _full_spec(shape):
    """Whole-array block for grid=()."""
    return pl.BlockSpec(shape, lambda: (0,) * len(shape))


def _rep_spec(shape):
    """Whole-array block, replicated (resident) across a 1-D grid."""
    return pl.BlockSpec(shape, lambda b: (0,) * len(shape))


def _pick_col_tile(d, max_tile=512):
    """Largest multiple of 128 dividing d (capped); full width fallback."""
    if d % 128 != 0:
        return d
    t = min(d, max_tile)
    t -= t % 128
    while d % t != 0:
        t -= 128
    return t


def _bn_rows(v, gamma, beta, eps=1e-5):
    """Training-mode BatchNorm1d over rows (biased variance), f32."""
    n = v.shape[0]
    mean = jnp.sum(v, axis=0, keepdims=True) * (1.0 / n)
    d = v - mean
    var = jnp.sum(d * d, axis=0, keepdims=True) * (1.0 / n)
    return d * lax.rsqrt(var + eps) * gamma + beta


# --------------------------------------------------------------------------------------
# one-time parameter preparation (review item #1: cache bf16 / transposed weights)
# --------------------------------------------------------------------------------------
def prepare_params(params, mxu_dtype=_MXU_DTYPE):
    C, K = params["cluster_weights"].shape
    D = params["hidden1_weights"].shape[1]
    prep = {
        # transposed so the in-kernel assignment matmul is a canonical (K,C)@(C,N) dot
        "cwt_mxu": jnp.transpose(jnp.asarray(params["cluster_weights"])).astype(mxu_dtype),
        "cw2_t": jnp.transpose(jnp.asarray(params["cluster_weights2"])).astype(jnp.float32),
        # rows permuted from torch's c-major flatten (c*K + k) to the kernel's k-major
        # flatten (k*C + c) so the VLAD output can be written lane-dense as (B, K, C).
        "w1_mxu": jnp.asarray(params["hidden1_weights"])
                     .reshape(C, K, D).transpose(1, 0, 2).reshape(K * C, D)
                     .astype(mxu_dtype),
        "bn2_gamma": jnp.asarray(params["bn2_gamma"], jnp.float32).reshape(1, D),
        "bn2_beta": jnp.asarray(params["bn2_beta"], jnp.float32).reshape(1, D),
    }
    if params.get("bn1_gamma") is not None:
        prep["bn1_gamma"] = jnp.asarray(params["bn1_gamma"], jnp.float32).reshape(K, 1)
        prep["bn1_beta"] = jnp.asarray(params["bn1_beta"], jnp.float32).reshape(K, 1)
    if params.get("cluster_biases") is not None:
        prep["cluster_biases"] = jnp.asarray(params["cluster_biases"],
                                             jnp.float32).reshape(K, 1)
    if params.get("gating_weights") is not None:
        prep["wg_mxu"] = jnp.asarray(params["gating_weights"]).astype(mxu_dtype)
    if params.get("gate_bn_gamma") is not None:
        prep["gate_bn_gamma"] = jnp.asarray(params["gate_bn_gamma"],
                                            jnp.float32).reshape(1, D)
        prep["gate_bn_beta"] = jnp.asarray(params["gate_bn_beta"],
                                           jnp.float32).reshape(1, D)
    if params.get("gating_biases") is not None:
        prep["gating_biases"] = jnp.asarray(params["gating_biases"],
                                            jnp.float32).reshape(1, D)
    return prep


# --------------------------------------------------------------------------------------
# kernel 1a: masked BatchNorm statistics over the assignment logits ("arbitrary" B axis)
# --------------------------------------------------------------------------------------
def _assign_stats_kernel(x_ref, m_ref, cwt_ref, mean_ref, rstd_ref,
                         sum_sc, ssq_sc, cnt_sc):
    b = pl.program_id(0)

    @pl.when(b == 0)
    def _():
        sum_sc[...] = jnp.zeros_like(sum_sc)
        ssq_sc[...] = jnp.zeros_like(ssq_sc)
        cnt_sc[...] = jnp.zeros_like(cnt_sc)

    xb = x_ref[0].astype(_MXU_DTYPE)                                  # (C, N)
    m_row = m_ref[0].astype(jnp.float32)                              # (1, N)
    logits = jnp.dot(cwt_ref[...], xb,
                     preferred_element_type=jnp.float32)              # (K, N)
    lm = logits * m_row
    sum_sc[...] += jnp.sum(lm, axis=1, keepdims=True)                 # (K, 1)
    ssq_sc[...] += jnp.sum(logits * lm, axis=1, keepdims=True)        # (K, 1)
    cnt_sc[...] += jnp.sum(m_row, axis=1, keepdims=True)              # (1, 1)

    @pl.when(b == pl.num_programs(0) - 1)
    def _():
        inv_cnt = 1.0 / jnp.maximum(cnt_sc[...], 1.0)
        mean = sum_sc[...] * inv_cnt
        var = jnp.maximum(ssq_sc[...] * inv_cnt - mean * mean, 0.0)
        mean_ref[...] = mean
        rstd_ref[...] = lax.rsqrt(var + 1e-5)


# --------------------------------------------------------------------------------------
# kernel 1b: soft-assignment -> masked VLAD pooling -> L2 norms  (B-parallel grid)
# --------------------------------------------------------------------------------------
def _vlad_tail(logits, xb_bf, m_row, cw2t_ref, o_ref):
    # softmax over clusters (axis 0), then zero the padded (masked) columns
    logits = logits - jnp.max(logits, axis=0, keepdims=True)
    e = jnp.exp(logits)
    p = e * pl.reciprocal(jnp.sum(e, axis=0, keepdims=True), approx=True)   # (K, N)
    p = p * m_row
    a_sum = jnp.sum(p, axis=1, keepdims=True)                               # (K, 1)
    # residual pooling: (K, N) @ (C, N)^T -> (K, C), bf16 MXU operands, f32 acc
    vlad = lax.dot_general(p.astype(_MXU_DTYPE), xb_bf,
                           (((1,), (1,)), ((), ())),
                           preferred_element_type=jnp.float32)              # (K, C)
    vlad = vlad - a_sum * cw2t_ref[...]
    # intra-normalisation over the feature axis (torch dim=1 of (B, C, K))
    ssq_c = jnp.sum(vlad * vlad, axis=1, keepdims=True)                     # (K, 1)
    vlad = vlad * lax.rsqrt(jnp.maximum(ssq_c, 1e-24))
    # global L2 over the flattened descriptor of this sample
    ssq = jnp.sum(jnp.sum(vlad * vlad, axis=1, keepdims=True),
                  axis=0, keepdims=True)                                    # (1, 1)
    vlad = vlad * lax.rsqrt(jnp.maximum(ssq, 1e-24))
    o_ref[0] = vlad.astype(o_ref.dtype)                                     # (K, C) lane-dense


def _vlad_bn_kernel(x_ref, m_ref, cwt_ref, cw2t_ref, mean_ref, rstd_ref,
                    gamma_ref, beta_ref, o_ref):
    xb_bf = x_ref[0].astype(_MXU_DTYPE)                                # (C, N)
    m_row = m_ref[0].astype(jnp.float32)                               # (1, N)
    logits = jnp.dot(cwt_ref[...], xb_bf,
                     preferred_element_type=jnp.float32)               # (K, N)
    # masked BatchNorm1d (training mode) with global stats; masked columns are zeroed
    # after the softmax, so applying the affine transform to them changes nothing.
    logits = ((logits - mean_ref[...]) * rstd_ref[...] * gamma_ref[...]
              + beta_ref[...])
    _vlad_tail(logits, xb_bf, m_row, cw2t_ref, o_ref)


def _vlad_bias_kernel(x_ref, m_ref, cwt_ref, cw2t_ref, bias_ref, o_ref):
    xb_bf = x_ref[0].astype(_MXU_DTYPE)
    m_row = m_ref[0].astype(jnp.float32)
    logits = jnp.dot(cwt_ref[...], xb_bf, preferred_element_type=jnp.float32)
    logits = logits + bias_ref[...]
    _vlad_tail(logits, xb_bf, m_row, cw2t_ref, o_ref)


def netvlad_aggregate(x_cn, mask, prep, *, add_batch_norm=True):
    """x_cn: (B, C, N), mask: (B, N) -> VLAD descriptor (B, K*C), bf16, k-major flatten."""
    B, C, N = x_cn.shape
    cwt = prep["cwt_mxu"]                 # (K, C) bf16
    cw2t = prep["cw2_t"]                  # (K, C) f32
    K = cwt.shape[0]
    m3 = mask.reshape(B, 1, N).astype(jnp.float32)

    x_spec = pl.BlockSpec((1, C, N), lambda b: (b, 0, 0))
    m_spec = pl.BlockSpec((1, 1, N), lambda b: (b, 0, 0))
    out_spec = pl.BlockSpec((1, K, C), lambda b: (b, 0, 0))
    out_shape = jax.ShapeDtypeStruct((B, K, C), _MXU_DTYPE)
    cp_par = pltpu.CompilerParams(dimension_semantics=("parallel",),
                                  vmem_limit_bytes=_VMEM_LIMIT)
    ce_vlad = pl.CostEstimate(
        flops=int(4 * B * N * C * K + 12 * B * K * C),
        transcendentals=int(B * N * K),
        bytes_accessed=int(4 * B * C * N + 4 * B * N + 8 * K * C + 2 * B * K * C))

    if add_batch_norm:
        mean, rstd = pl.pallas_call(
            _assign_stats_kernel,
            out_shape=(jax.ShapeDtypeStruct((K, 1), jnp.float32),
                       jax.ShapeDtypeStruct((K, 1), jnp.float32)),
            grid=(B,),
            in_specs=[x_spec, m_spec, _rep_spec((K, C))],
            out_specs=(pl.BlockSpec((K, 1), lambda b: (0, 0)),
                       pl.BlockSpec((K, 1), lambda b: (0, 0))),
            scratch_shapes=[pltpu.VMEM((K, 1), jnp.float32),
                            pltpu.VMEM((K, 1), jnp.float32),
                            pltpu.VMEM((1, 1), jnp.float32)],
            compiler_params=pltpu.CompilerParams(
                dimension_semantics=("arbitrary",),
                vmem_limit_bytes=_VMEM_LIMIT),
            cost_estimate=pl.CostEstimate(
                flops=int(2 * B * N * C * K + 6 * B * N * K),
                transcendentals=0,
                bytes_accessed=int(4 * B * C * N + 4 * B * N + 2 * K * C + 8 * K)),
        )(x_cn, m3, cwt)
        vlad = pl.pallas_call(
            _vlad_bn_kernel,
            out_shape=out_shape,
            grid=(B,),
            in_specs=[x_spec, m_spec, _rep_spec((K, C)), _rep_spec((K, C)),
                      _rep_spec((K, 1)), _rep_spec((K, 1)),
                      _rep_spec((K, 1)), _rep_spec((K, 1))],
            out_specs=out_spec,
            compiler_params=cp_par, cost_estimate=ce_vlad,
        )(x_cn, m3, cwt, cw2t, mean, rstd, prep["bn1_gamma"], prep["bn1_beta"])
    else:
        vlad = pl.pallas_call(
            _vlad_bias_kernel,
            out_shape=out_shape,
            grid=(B,),
            in_specs=[x_spec, m_spec, _rep_spec((K, C)), _rep_spec((K, C)),
                      _rep_spec((K, 1))],
            out_specs=out_spec,
            compiler_params=cp_par, cost_estimate=ce_vlad,
        )(x_cn, m3, cwt, cw2t, prep["cluster_biases"])
    # trailing-dims merge (free); k-major order matches the permuted hidden1 weights
    return vlad.reshape(B, K * C)


# --------------------------------------------------------------------------------------
# kernel 2 (fused head): hidden projection + BN2 (+ context gating) in one pallas_call
# --------------------------------------------------------------------------------------
def _head_bn_gate_bn_kernel(v_ref, w1_ref, g2_ref, b2_ref, wg_ref, gg_ref, gb_ref, o_ref):
    h = jnp.dot(v_ref[...], w1_ref[...], preferred_element_type=jnp.float32)
    h = _bn_rows(h, g2_ref[...], b2_ref[...])
    g = jnp.dot(h.astype(_MXU_DTYPE), wg_ref[...], preferred_element_type=jnp.float32)
    g = _bn_rows(g, gg_ref[...], gb_ref[...])
    o_ref[...] = (h * jax.nn.sigmoid(g)).astype(o_ref.dtype)


def _head_bn_gate_bias_kernel(v_ref, w1_ref, g2_ref, b2_ref, wg_ref, bias_ref, o_ref):
    h = jnp.dot(v_ref[...], w1_ref[...], preferred_element_type=jnp.float32)
    h = _bn_rows(h, g2_ref[...], b2_ref[...])
    g = jnp.dot(h.astype(_MXU_DTYPE), wg_ref[...],
                preferred_element_type=jnp.float32) + bias_ref[...]
    o_ref[...] = (h * jax.nn.sigmoid(g)).astype(o_ref.dtype)


def _head_bn_only_kernel(v_ref, w1_ref, g2_ref, b2_ref, o_ref):
    h = jnp.dot(v_ref[...], w1_ref[...], preferred_element_type=jnp.float32)
    o_ref[...] = _bn_rows(h, g2_ref[...], b2_ref[...]).astype(o_ref.dtype)


def head_fused(vlad, prep, *, add_batch_norm=True, gating=True):
    """vlad: (B, M) bf16 -> (B, D) f32, everything resident in VMEM, single launch."""
    B, M = vlad.shape
    w1 = prep["w1_mxu"]
    D = w1.shape[1]
    g2, b2 = prep["bn2_gamma"], prep["bn2_beta"]
    cp = pltpu.CompilerParams(vmem_limit_bytes=_VMEM_LIMIT)
    out_shape = jax.ShapeDtypeStruct((B, D), jnp.float32)
    if not gating:
        return pl.pallas_call(
            _head_bn_only_kernel, out_shape=out_shape, grid=(),
            in_specs=[_full_spec((B, M)), _full_spec((M, D)),
                      _full_spec((1, D)), _full_spec((1, D))],
            out_specs=_full_spec((B, D)), compiler_params=cp,
            cost_estimate=pl.CostEstimate(
                flops=int(2 * B * M * D + 8 * B * D), transcendentals=0,
                bytes_accessed=int(2 * B * M + 2 * M * D + 8 * D + 4 * B * D)),
        )(vlad, w1, g2, b2)
    wg = prep["wg_mxu"]
    ce = pl.CostEstimate(
        flops=int(2 * B * M * D + 2 * B * D * D + 20 * B * D),
        transcendentals=int(B * D),
        bytes_accessed=int(2 * B * M + 2 * M * D + 2 * D * D + 16 * D + 4 * B * D))
    if add_batch_norm:
        return pl.pallas_call(
            _head_bn_gate_bn_kernel, out_shape=out_shape, grid=(),
            in_specs=[_full_spec((B, M)), _full_spec((M, D)),
                      _full_spec((1, D)), _full_spec((1, D)),
                      _full_spec((D, D)), _full_spec((1, D)), _full_spec((1, D))],
            out_specs=_full_spec((B, D)), compiler_params=cp, cost_estimate=ce,
        )(vlad, w1, g2, b2, wg, prep["gate_bn_gamma"], prep["gate_bn_beta"])
    return pl.pallas_call(
        _head_bn_gate_bias_kernel, out_shape=out_shape, grid=(),
        in_specs=[_full_spec((B, M)), _full_spec((M, D)),
                  _full_spec((1, D)), _full_spec((1, D)),
                  _full_spec((D, D)), _full_spec((1, D))],
        out_specs=_full_spec((B, D)), compiler_params=cp, cost_estimate=ce,
    )(vlad, w1, g2, b2, wg, prep["gating_biases"])


# --------------------------------------------------------------------------------------
# column-tiled fallback head (for large D where the fused weights would not fit VMEM)
# --------------------------------------------------------------------------------------
def _linear_bn_kernel(x_ref, w_ref, gamma_ref, beta_ref, o_ref):
    h = jnp.dot(x_ref[...], w_ref[...], preferred_element_type=jnp.float32)
    o_ref[...] = _bn_rows(h, gamma_ref[...], beta_ref[...]).astype(o_ref.dtype)


def hidden_projection_bn(x, w, gamma, beta, *, out_dtype, max_col_tile=512):
    B, M = x.shape
    D = w.shape[1]
    tn = _pick_col_tile(D, max_col_tile)
    return pl.pallas_call(
        _linear_bn_kernel,
        out_shape=jax.ShapeDtypeStruct((B, D), out_dtype),
        grid=(D // tn,),
        in_specs=[pl.BlockSpec((B, M), lambda j: (0, 0)),      # resident bf16 LHS
                  pl.BlockSpec((M, tn), lambda j: (0, j)),     # W column tiles
                  pl.BlockSpec((1, tn), lambda j: (0, j)),
                  pl.BlockSpec((1, tn), lambda j: (0, j))],
        out_specs=pl.BlockSpec((B, tn), lambda j: (0, j)),     # lane-dense stores
        compiler_params=pltpu.CompilerParams(
            dimension_semantics=("parallel",), vmem_limit_bytes=_VMEM_LIMIT),
        cost_estimate=pl.CostEstimate(
            flops=int(2 * B * M * D + 8 * B * D), transcendentals=0,
            bytes_accessed=int(2 * B * M + 2 * M * D + 8 * D + 2 * B * D)),
    )(x, w, gamma, beta)


def _gating_bn_kernel(x_ref, w_ref, gamma_ref, beta_ref, o_ref, *, tn):
    j = pl.program_id(0)
    g = jnp.dot(x_ref[...], w_ref[...], preferred_element_type=jnp.float32)
    g = _bn_rows(g, gamma_ref[...], beta_ref[...])
    start = pl.multiple_of(j * tn, tn)
    xt = x_ref[:, pl.ds(start, tn)].astype(jnp.float32)   # slice the resident LHS
    o_ref[...] = (xt * jax.nn.sigmoid(g)).astype(o_ref.dtype)


def _gating_bias_kernel(x_ref, w_ref, bias_ref, o_ref, *, tn):
    j = pl.program_id(0)
    g = jnp.dot(x_ref[...], w_ref[...],
                preferred_element_type=jnp.float32) + bias_ref[...]
    start = pl.multiple_of(j * tn, tn)
    xt = x_ref[:, pl.ds(start, tn)].astype(jnp.float32)
    o_ref[...] = (xt * jax.nn.sigmoid(g)).astype(o_ref.dtype)


def gating_context(x, wg, *, add_batch_norm=True, gamma=None, beta=None, biases=None,
                   max_col_tile=512):
    B, D = x.shape
    tn = _pick_col_tile(D, max_col_tile)
    lhs_spec = pl.BlockSpec((B, D), lambda j: (0, 0))
    w_spec = pl.BlockSpec((D, tn), lambda j: (0, j))
    vec_spec = pl.BlockSpec((1, tn), lambda j: (0, j))
    out_spec = pl.BlockSpec((B, tn), lambda j: (0, j))
    cp = pltpu.CompilerParams(dimension_semantics=("parallel",),
                              vmem_limit_bytes=_VMEM_LIMIT)
    ce = pl.CostEstimate(flops=int(2 * B * D * D + 12 * B * D),
                         transcendentals=int(B * D),
                         bytes_accessed=int(2 * B * D + 2 * D * D + 8 * D + 4 * B * D))
    if add_batch_norm:
        return pl.pallas_call(
            partial(_gating_bn_kernel, tn=tn),
            out_shape=jax.ShapeDtypeStruct((B, D), jnp.float32),
            grid=(D // tn,),
            in_specs=[lhs_spec, w_spec, vec_spec, vec_spec],
            out_specs=out_spec, compiler_params=cp, cost_estimate=ce,
        )(x, wg, gamma, beta)
    return pl.pallas_call(
        partial(_gating_bias_kernel, tn=tn),
        out_shape=jax.ShapeDtypeStruct((B, D), jnp.float32),
        grid=(D // tn,),
        in_specs=[lhs_spec, w_spec, vec_spec],
        out_specs=out_spec, compiler_params=cp, cost_estimate=ce,
    )(x, wg, biases)


# --------------------------------------------------------------------------------------
# full NetVLAD_mask forward
# --------------------------------------------------------------------------------------
def netvlad_mask_forward(x, mask, prep, *, add_batch_norm=True, gating=True,
                         fuse_head=None):
    """x: (B, C, N) or (B, C, H, W); mask: (B, N) or (B, H, W)  ->  (B, out_dim)."""
    B, C = x.shape[:2]
    assert B > 1, "training-mode BatchNorm needs batch size > 1"
    x_cn = x.reshape(B, C, -1)
    mask2 = mask.reshape(B, -1)
    vlad = netvlad_aggregate(x_cn, mask2, prep, add_batch_norm=add_batch_norm)

    M = vlad.shape[1]
    D = prep["bn2_gamma"].shape[1]
    if fuse_head is None:   # auto: fuse when the resident weights comfortably fit VMEM
        fused_bytes = 2 * M * D + (2 * D * D if gating else 0) + 2 * B * M
        fuse_head = fused_bytes <= _VMEM_LIMIT // 2
    if fuse_head:
        return head_fused(vlad, prep, add_batch_norm=add_batch_norm, gating=gating)

    out_dtype = _MXU_DTYPE if gating else jnp.float32   # bf16 between the two kernels
    h = hidden_projection_bn(vlad, prep["w1_mxu"], prep["bn2_gamma"], prep["bn2_beta"],
                             out_dtype=out_dtype)
    if not gating:
        return h
    if add_batch_norm:
        return gating_context(h, prep["wg_mxu"], add_batch_norm=True,
                              gamma=prep["gate_bn_gamma"], beta=prep["gate_bn_beta"])
    return gating_context(h, prep["wg_mxu"], add_batch_norm=False,
                          biases=prep["gating_biases"])


# --------------------------------------------------------------------------------------
# pure-JAX reference (PyTorch training-mode semantics)
# --------------------------------------------------------------------------------------
def reference_forward(x, mask, p, *, add_batch_norm=True, gating=True, mxu_dtype=None):
    def dense(a, b):
        if mxu_dtype is None:
            return jnp.dot(a, b, preferred_element_type=jnp.float32)
        return jnp.dot(a.astype(mxu_dtype), b.astype(mxu_dtype),
                       preferred_element_type=jnp.float32)

    B, C = x.shape[:2]
    x3 = x.reshape(B, C, -1).astype(jnp.float32)
    N = x3.shape[-1]
    m = mask.reshape(B, N).astype(jnp.float32)
    xt = jnp.transpose(x3, (0, 2, 1)) * m[..., None]                  # masked (B, N, C)
    K = p["cluster_weights"].shape[1]
    assign = dense(xt.reshape(B * N, C), p["cluster_weights"])
    mf = m.reshape(B * N, 1)
    if add_batch_norm:
        cnt = jnp.maximum(jnp.sum(mf), 1.0)
        mean = jnp.sum(assign * mf, axis=0, keepdims=True) / cnt
        var = jnp.sum(((assign - mean) ** 2) * mf, axis=0, keepdims=True) / cnt
        bn = (assign - mean) / jnp.sqrt(var + 1e-5) * p["bn1_gamma"] + p["bn1_beta"]
        assign = jnp.where(mf > 0, bn, assign)
    else:
        assign = assign + p["cluster_biases"]
    assign = jax.nn.softmax(assign, axis=-1) * mf
    a3 = assign.reshape(B, N, K)
    a_sum = jnp.sum(a3, axis=1, keepdims=True)                        # (B, 1, K)
    a = a_sum * p["cluster_weights2"][None]                           # (B, C, K)
    if mxu_dtype is None:
        vlad = jnp.einsum('bnk,bnc->bck', a3, xt, preferred_element_type=jnp.float32)
    else:
        vlad = jnp.einsum('bnk,bnc->bck', a3.astype(mxu_dtype), xt.astype(mxu_dtype),
                          preferred_element_type=jnp.float32)
    vlad = vlad - a
    vlad = vlad / jnp.maximum(jnp.linalg.norm(vlad, axis=1, keepdims=True), 1e-12)
    vlad = vlad.reshape(B, C * K)
    vlad = vlad / jnp.maximum(jnp.linalg.norm(vlad, axis=1, keepdims=True), 1e-12)

    h = dense(vlad, p["hidden1_weights"])
    mean = jnp.mean(h, axis=0, keepdims=True)
    var = jnp.mean((h - mean) ** 2, axis=0, keepdims=True)
    h = (h - mean) / jnp.sqrt(var + 1e-5) * p["bn2_gamma"] + p["bn2_beta"]
    if gating:
        g = dense(h, p["gating_weights"])
        if add_batch_norm:
            gm = jnp.mean(g, axis=0, keepdims=True)
            gv = jnp.mean((g - gm) ** 2, axis=0, keepdims=True)
            g = (g - gm) / jnp.sqrt(gv + 1e-5) * p["gate_bn_gamma"] + p["gate_bn_beta"]
        else:
            g = g + p["gating_biases"]
        h = h * jax.nn.sigmoid(g)
    return h


# --------------------------------------------------------------------------------------
if __name__ == "__main__":
    B, C, H, W, K = 8, 128, 8, 8, 16       # image-style input: x (B, C, H, W)
    D = C                                  # output_dim == feature_size in this module
    N = H * W

    keys = jax.random.split(jax.random.PRNGKey(0), 14)
    x = jax.random.normal(keys[0], (B, C, H, W), dtype=jnp.float32)
    mask = jax.random.uniform(keys[1], (B, H, W)) < 0.75
    mask = mask.at[:, 0, 0].set(True)      # every sample keeps at least one real point

    s = 1.0 / math.sqrt(C)
    params = {
        "cluster_weights": jax.random.normal(keys[2], (C, K), jnp.float32) * s,
        "cluster_weights2": jax.random.normal(keys[3], (C, K), jnp.float32) * s,
        "cluster_biases": jax.random.normal(keys[4], (K,), jnp.float32) * s,
        "bn1_gamma": 1.0 + 0.1 * jax.random.normal(keys[5], (K,), jnp.float32),
        "bn1_beta": 0.1 * jax.random.normal(keys[6], (K,), jnp.float32),
        "hidden1_weights": jax.random.normal(keys[7], (K * C, D), jnp.float32) * s,
        "bn2_gamma": 1.0 + 0.1 * jax.random.normal(keys[8], (D,), jnp.float32),
        "bn2_beta": 0.1 * jax.random.normal(keys[9], (D,), jnp.float32),
        "gating_weights": jax.random.normal(keys[10], (D, D), jnp.float32) / math.sqrt(D),
        "gating_biases": jax.random.normal(keys[11], (D,), jnp.float32) / math.sqrt(D),
        "gate_bn_gamma": 1.0 + 0.1 * jax.random.normal(keys[12], (D,), jnp.float32),
        "gate_bn_beta": 0.1 * jax.random.normal(keys[13], (D,), jnp.float32),
    }

    prep = prepare_params(params)          # one-time bf16 casts / transposes / permutes
    fwd = jax.jit(netvlad_mask_forward,
                  static_argnames=("add_batch_norm", "gating", "fuse_head"))

    for abn in (True, False):
        for fused in (True, False):
            out = fwd(x, mask, prep, add_batch_norm=abn, gating=True, fuse_head=fused)
            out = jax.block_until_ready(out)
            assert out.shape == (B, D)
            assert bool(jnp.all(jnp.isfinite(out)))
            # matched-precision reference (same bf16 MXU operands as the kernels)
            ref_m = reference_forward(x, mask, params, add_batch_norm=abn, gating=True,
                                      mxu_dtype=_MXU_DTYPE)
            assert jnp.allclose(out, ref_m, atol=3e-2, rtol=3e-2), \
                (abn, fused, float(jnp.max(jnp.abs(out - ref_m))))
            # full-f32 reference (PyTorch training-mode forward); loose tolerance covers
            # the bf16 MXU operands requested by the performance review.
            ref_f = reference_forward(x, mask, params, add_batch_norm=abn, gating=True,
                                      mxu_dtype=None)
            assert jnp.allclose(out, ref_f, atol=1.5e-1, rtol=1.5e-1), \
                (abn, fused, float(jnp.max(jnp.abs(out - ref_f))))

    # no-gating variant (cfgs.gating == False)
    out = fwd(x, mask, prep, add_batch_norm=True, gating=False, fuse_head=True)
    out = jax.block_until_ready(out)
    ref = reference_forward(x, mask, params, add_batch_norm=True, gating=False,
                            mxu_dtype=None)
    assert jnp.allclose(out, ref, atol=1.5e-1, rtol=1.5e-1), \
        float(jnp.max(jnp.abs(out - ref)))

    print("KERNEL_OK")
</pallas_src>

<mosaic_0001>
module attributes {stable_mosaic.version = 11 : i64} {
  func.func @_assign_stats_kernel(%arg0: i32, %arg1: memref<1x128x64xf32, #tpu.memory_space<vmem>>, %arg2: memref<1x1x64xf32, #tpu.memory_space<vmem>>, %arg3: memref<16x128xbf16, #tpu.memory_space<vmem>>, %arg4: memref<16x1xf32, #tpu.memory_space<vmem>>, %arg5: memref<16x1xf32, #tpu.memory_space<vmem>>, %arg6: memref<16x1xf32, #tpu.memory_space<vmem>>, %arg7: memref<16x1xf32, #tpu.memory_space<vmem>>, %arg8: memref<1x1xf32, #tpu.memory_space<vmem>>) attributes {dimension_semantics = [#tpu.dimension_semantics<arbitrary>], iteration_bounds = array<i64: 8>, scalar_prefetch = 0 : i64, scratch_operands = 3 : i64, tpu.core_type = #tpu.core_type<tc>, window_params = [{transform_indices = @transform_0, window_bounds = array<i64: 1, 128, 64>}, {transform_indices = @transform_1, window_bounds = array<i64: 1, 1, 64>}, {pipeline_mode = #tpu.pipeline_mode<synchronous>, transform_indices = @transform_2, window_bounds = array<i64: 16, 128>}, {pipeline_mode = #tpu.pipeline_mode<synchronous>, transform_indices = @transform_3, window_bounds = array<i64: 16, 1>}, {pipeline_mode = #tpu.pipeline_mode<synchronous>, transform_indices = @transform_4, window_bounds = array<i64: 16, 1>}]} {
    %c0_i32 = arith.constant 0 : i32
    %0 = arith.cmpi eq, %arg0, %c0_i32 : i32
    %1 = arith.extui %0 : i1 to i32
    %c0_i32_0 = arith.constant 0 : i32
    %2 = arith.cmpi ne, %1, %c0_i32_0 : i32
    scf.if %2 {
      %cst_24 = arith.constant 0.000000e+00 : f32
      %31 = vector.broadcast %cst_24 : f32 to vector<16x1xf32>
      %c0_25 = arith.constant 0 : index
      %c0_26 = arith.constant 0 : index
      %32 = vector.load %arg6[%c0_25, %c0_26] : memref<16x1xf32, #tpu.memory_space<vmem>>, vector<16x1xf32>
      tpu.vector_store %arg6[%c0_25, %c0_26], %31 {strides = array<i32>} : memref<16x1xf32, #tpu.memory_space<vmem>>, vector<16x1xf32>,
      %cst_27 = arith.constant 0.000000e+00 : f32
      %33 = vector.broadcast %cst_27 : f32 to vector<16x1xf32>
      %c0_28 = arith.constant 0 : index
      %c0_29 = arith.constant 0 : index
      %34 = vector.load %arg7[%c0_28, %c0_29] : memref<16x1xf32, #tpu.memory_space<vmem>>, vector<16x1xf32>
      tpu.vector_store %arg7[%c0_28, %c0_29], %33 {strides = array<i32>} : memref<16x1xf32, #tpu.memory_space<vmem>>, vector<16x1xf32>,
      %cst_30 = arith.constant 0.000000e+00 : f32
      %35 = vector.broadcast %cst_30 : f32 to vector<1x1xf32>
      %c0_31 = arith.constant 0 : index
      %c0_32 = arith.constant 0 : index
      %36 = vector.load %arg8[%c0_31, %c0_32] : memref<1x1xf32, #tpu.memory_space<vmem>>, vector<1x1xf32>
      tpu.vector_store %arg8[%c0_31, %c0_32], %35 {strides = array<i32>} : memref<1x1xf32, #tpu.memory_space<vmem>>, vector<1x1xf32>,
    } else {
    }
    %c0 = arith.constant 0 : index
    %c0_1 = arith.constant 0 : index
    %c0_2 = arith.constant 0 : index
    %3 = vector.load %arg1[%c0, %c0_1, %c0_2] : memref<1x128x64xf32, #tpu.memory_space<vmem>>, vector<1x128x64xf32>
    %4 = vector.shape_cast %3 : vector<1x128x64xf32> to vector<128x64xf32>
    %5 = arith.truncf %4 : vector<128x64xf32> to vector<128x64xbf16>
    %c0_3 = arith.constant 0 : index
    %c0_4 = arith.constant 0 : index
    %c0_5 = arith.constant 0 : index
    %6 = vector.load %arg2[%c0_3, %c0_4, %c0_5] : memref<1x1x64xf32, #tpu.memory_space<vmem>>, vector<1x1x64xf32>
    %7 = vector.shape_cast %6 : vector<1x1x64xf32> to vector<1x64xf32>
    %c0_6 = arith.constant 0 : index
    %c0_7 = arith.constant 0 : index
    %8 = vector.load %arg3[%c0_6, %c0_7] : memref<16x128xbf16, #tpu.memory_space<vmem>>, vector<16x128xbf16>
    %cst = arith.constant dense<0.000000e+00> : vector<16x64xf32>
    %9 = tpu.matmul %8, %5, %cst {dimension_numbers = #tpu.dot_dimension_numbers<[1], [0], [0], [1], [0, 0, 1, 1], [], []>} : vector<16x128xbf16>, vector<128x64xbf16>, vector<16x64xf32> -> vector<16x64xf32>
    %10 = vector.broadcast %7 : vector<1x64xf32> to vector<16x64xf32>
    %11 = arith.mulf %9, %10 : vector<16x64xf32>
    %c0_8 = arith.constant 0 : index
    %c0_9 = arith.constant 0 : index
    %12 = vector.load %arg6[%c0_8, %c0_9] : memref<16x1xf32, #tpu.memory_space<vmem>>, vector<16x1xf32>
    %cst_10 = arith.constant dense<0.000000e+00> : vector<16xf32>
    %13 = vector.multi_reduction <add>, %11, %cst_10 [1] : vector<16x64xf32> to vector<16xf32>
    %14 = vector.shape_cast %13 : vector<16xf32> to vector<16x1xf32>
    %15 = arith.addf %12, %14 : vector<16x1xf32>
    %c0_11 = arith.constant 0 : index
    %c0_12 = arith.constant 0 : index
    %16 = vector.load %arg6[%c0_11, %c0_12] : memref<16x1xf32, #tpu.memory_space<vmem>>, vector<16x1xf32>
    tpu.vector_store %arg6[%c0_11, %c0_12], %15 {strides = array<i32>} : memref<16x1xf32, #tpu.memory_space<vmem>>, vector<16x1xf32>,
    %c0_13 = arith.constant 0 : index
    %c0_14 = arith.constant 0 : index
    %17 = vector.load %arg7[%c0_13, %c0_14] : memref<16x1xf32, #tpu.memory_space<vmem>>, vector<16x1xf32>
    %18 = arith.mulf %9, %11 : vector<16x64xf32>
    %cst_15 = arith.constant dense<0.000000e+00> : vector<16xf32>
    %19 = vector.multi_reduction <add>, %18, %cst_15 [1] : vector<16x64xf32> to vector<16xf32>
    %20 = vector.shape_cast %19 : vector<16xf32> to vector<16x1xf32>
    %21 = arith.addf %17, %20 : vector<16x1xf32>
    %c0_16 = arith.constant 0 : index
    %c0_17 = arith.constant 0 : index
    %22 = vector.load %arg7[%c0_16, %c0_17] : memref<16x1xf32, #tpu.memory_space<vmem>>, vector<16x1xf32>
    tpu.vector_store %arg7[%c0_16, %c0_17], %21 {strides = array<i32>} : memref<16x1xf32, #tpu.memory_space<vmem>>, vector<16x1xf32>,
    %c0_18 = arith.constant 0 : index
    %c0_19 = arith.constant 0 : index
    %23 = vector.load %arg8[%c0_18, %c0_19] : memref<1x1xf32, #tpu.memory_space<vmem>>, vector<1x1xf32>
    %cst_20 = arith.constant dense<0.000000e+00> : vector<1xf32>
    %24 = vector.multi_reduction <add>, %7, %cst_20 [1] : vector<1x64xf32> to vector<1xf32>
    %25 = vector.shape_cast %24 : vector<1xf32> to vector<1x1xf32>
    %26 = arith.addf %23, %25 : vector<1x1xf32>
    %c0_21 = arith.constant 0 : index
    %c0_22 = arith.constant 0 : index
    %27 = vector.load %arg8[%c0_21, %c0_22] : memref<1x1xf32, #tpu.memory_space<vmem>>, vector<1x1xf32>
    tpu.vector_store %arg8[%c0_21, %c0_22], %26 {strides = array<i32>} : memref<1x1xf32, #tpu.memory_space<vmem>>, vector<1x1xf32>,
    %c7_i32 = arith.constant 7 : i32
    %28 = arith.cmpi eq, %arg0, %c7_i32 : i32
    %29 = arith.extui %28 : i1 to i32
    %c0_i32_23 = arith.constant 0 : i32
    %30 = arith.cmpi ne, %29, %c0_i32_23 : i32
    scf.if %30 {
      %c0_24 = arith.constant 0 : index
      %c0_25 = arith.constant 0 : index
      %31 = vector.load %arg8[%c0_24, %c0_25] : memref<1x1xf32, #tpu.memory_space<vmem>>, vector<1x1xf32>
      %cst_26 = arith.constant 1.000000e+00 : f32
      %32 = vector.broadcast %cst_26 : f32 to vector<1x1xf32>
      %33 = arith.maximumf %31, %32 : vector<1x1xf32>
      %cst_27 = arith.constant 1.000000e+00 : f32
      %34 = vector.broadcast %cst_27 : f32 to vector<1x1xf32>
      %35 = arith.divf %34, %33 : vector<1x1xf32>
      %c0_28 = arith.constant 0 : index
      %c0_29 = arith.constant 0 : index
      %36 = vector.load %arg6[%c0_28, %c0_29] : memref<16x1xf32, #tpu.memory_space<vmem>>, vector<16x1xf32>
      %37 = vector.broadcast %35 : vector<1x1xf32> to vector<16x1xf32>
      %38 = arith.mulf %36, %37 : vector<16x1xf32>
      %c0_30 = arith.constant 0 : index
      %c0_31 = arith.constant 0 : index
      %39 = vector.load %arg7[%c0_30, %c0_31] : memref<16x1xf32, #tpu.memory_space<vmem>>, vector<16x1xf32>
      %40 = vector.broadcast %35 : vector<1x1xf32> to vector<16x1xf32>
      %41 = arith.mulf %39, %40 : vector<16x1xf32>
      %42 = arith.mulf %38, %38 : vector<16x1xf32>
      %43 = arith.subf %41, %42 : vector<16x1xf32>
      %cst_32 = arith.constant 0.000000e+00 : f32
      %44 = vector.broadcast %cst_32 : f32 to vector<16x1xf32>
      %45 = arith.maximumf %43, %44 : vector<16x1xf32>
      %c0_33 = arith.constant 0 : index
      %c0_34 = arith.constant 0 : index
      %46 = vector.load %arg4[%c0_33, %c0_34] : memref<16x1xf32, #tpu.memory_space<vmem>>, vector<16x1xf32>
      tpu.vector_store %arg4[%c0_33, %c0_34], %38 {strides = array<i32>} : memref<16x1xf32, #tpu.memory_space<vmem>>, vector<16x1xf32>,
      %cst_35 = arith.constant 9.99999974E-6 : f32
      %47 = vector.broadcast %cst_35 : f32 to vector<16x1xf32>
      %48 = arith.addf %45, %47 : vector<16x1xf32>
      %49 = math.rsqrt %48 : vector<16x1xf32>
      %c0_36 = arith.constant 0 : index
      %c0_37 = arith.constant 0 : index
      %50 = vector.load %arg5[%c0_36, %c0_37] : memref<16x1xf32, #tpu.memory_space<vmem>>, vector<16x1xf32>
      tpu.vector_store %arg5[%c0_36, %c0_37], %49 {strides = array<i32>} : memref<16x1xf32, #tpu.memory_space<vmem>>, vector<16x1xf32>,
    } else {
    }
    return
  }
  func.func @transform_0(%arg0: i32) -> (i32, i32, i32) {
    %c0_i32 = arith.constant 0 : i32
    %c0_i32_0 = arith.constant 0 : i32
    %c0_i32_1 = arith.constant 0 : i32
    return %arg0, %c0_i32, %c0_i32_0 : i32, i32, i32
  }
  func.func @transform_1(%arg0: i32) -> (i32, i32, i32) {
    %c0_i32 = arith.constant 0 : i32
    %c0_i32_0 = arith.constant 0 : i32
    %c0_i32_1 = arith.constant 0 : i32
    return %arg0, %c0_i32, %c0_i32_0 : i32, i32, i32
  }
  func.func @transform_2(%arg0: i32) -> (i32, i32) {
    %c0_i32 = arith.constant 0 : i32
    %c0_i32_0 = arith.constant 0 : i32
    %c0_i32_1 = arith.constant 0 : i32
    return %c0_i32, %c0_i32_0 : i32, i32
  }
  func.func @transform_3(%arg0: i32) -> (i32, i32) {
    %c0_i32 = arith.constant 0 : i32
    %c0_i32_0 = arith.constant 0 : i32
    %c0_i32_1 = arith.constant 0 : i32
    return %c0_i32, %c0_i32_0 : i32, i32
  }
  func.func @transform_4(%arg0: i32) -> (i32, i32) {
    %c0_i32 = arith.constant 0 : i32
    %c0_i32_0 = arith.constant 0 : i32
    %c0_i32_1 = arith.constant 0 : i32
    return %c0_i32, %c0_i32_0 : i32, i32
  }
}

module attributes {stable_mosaic.version = 11 : i64} {
  func.func @_head_bn_gate_bn_kernel(%arg0: memref<8x2048xbf16, #tpu.memory_space<vmem>>, %arg1: memref<2048x128xbf16, #tpu.memory_space<vmem>>, %arg2: memref<1x128xf32, #tpu.memory_space<vmem>>, %arg3: memref<1x128xf32, #tpu.memory_space<vmem>>, %arg4: memref<128x128xbf16, #tpu.memory_space<vmem>>, %arg5: memref<1x128xf32, #tpu.memory_space<vmem>>, %arg6: memref<1x128xf32, #tpu.memory_space<vmem>>, %arg7: memref<8x128xf32, #tpu.memory_space<vmem>>) attributes {dimension_semantics = [], scalar_prefetch = 0 : i64, scratch_operands = 0 : i64, tpu.core_type = #tpu.core_type<tc>} {
    %c0 = arith.constant 0 : index
    %c0_0 = arith.constant 0 : index
    %0 = vector.load %arg0[%c0, %c0_0] : memref<8x2048xbf16, #tpu.memory_space<vmem>>, vector<8x2048xbf16>
    %c0_1 = arith.constant 0 : index
    %c0_2 = arith.constant 0 : index
    %1 = vector.load %arg1[%c0_1, %c0_2] : memref<2048x128xbf16, #tpu.memory_space<vmem>>, vector<2048x128xbf16>
    %cst = arith.constant dense<0.000000e+00> : vector<8x128xf32>
    %2 = tpu.matmul %0, %1, %cst {dimension_numbers = #tpu.dot_dimension_numbers<[1], [0], [0], [1], [0, 0, 1, 1], [], []>} : vector<8x2048xbf16>, vector<2048x128xbf16>, vector<8x128xf32> -> vector<8x128xf32>
    %c0_3 = arith.constant 0 : index
    %c0_4 = arith.constant 0 : index
    %3 = vector.load %arg2[%c0_3, %c0_4] : memref<1x128xf32, #tpu.memory_space<vmem>>, vector<1x128xf32>
    %c0_5 = arith.constant 0 : index
    %c0_6 = arith.constant 0 : index
    %4 = vector.load %arg3[%c0_5, %c0_6] : memref<1x128xf32, #tpu.memory_space<vmem>>, vector<1x128xf32>
    %cst_7 = arith.constant dense<0.000000e+00> : vector<128xf32>
    %5 = vector.multi_reduction <add>, %2, %cst_7 [0] : vector<8x128xf32> to vector<128xf32>
    %6 = vector.shape_cast %5 : vector<128xf32> to vector<1x128xf32>
    %cst_8 = arith.constant 1.250000e-01 : f32
    %7 = vector.broadcast %cst_8 : f32 to vector<1x128xf32>
    %8 = arith.mulf %6, %7 : vector<1x128xf32>
    %9 = vector.broadcast %8 : vector<1x128xf32> to vector<8x128xf32>
    %10 = arith.subf %2, %9 : vector<8x128xf32>
    %11 = arith.mulf %10, %10 : vector<8x128xf32>
    %cst_9 = arith.constant dense<0.000000e+00> : vector<128xf32>
    %12 = vector.multi_reduction <add>, %11, %cst_9 [0] : vector<8x128xf32> to vector<128xf32>
    %13 = vector.shape_cast %12 : vector<128xf32> to vector<1x128xf32>
    %cst_10 = arith.constant 1.250000e-01 : f32
    %14 = vector.broadcast %cst_10 : f32 to vector<1x128xf32>
    %15 = arith.mulf %13, %14 : vector<1x128xf32>
    %cst_11 = arith.constant 9.99999974E-6 : f32
    %16 = vector.broadcast %cst_11 : f32 to vector<1x128xf32>
    %17 = arith.addf %15, %16 : vector<1x128xf32>
    %18 = math.rsqrt %17 : vector<1x128xf32>
    %19 = vector.broadcast %18 : vector<1x128xf32> to vector<8x128xf32>
    %20 = arith.mulf %10, %19 : vector<8x128xf32>
    %21 = vector.broadcast %3 : vector<1x128xf32> to vector<8x128xf32>
    %22 = arith.mulf %20, %21 : vector<8x128xf32>
    %23 = vector.broadcast %4 : vector<1x128xf32> to vector<8x128xf32>
    %24 = arith.addf %22, %23 : vector<8x128xf32>
    %25 = arith.truncf %24 : vector<8x128xf32> to vector<8x128xbf16>
    %c0_12 = arith.constant 0 : index
    %c0_13 = arith.constant 0 : index
    %26 = vector.load %arg4[%c0_12, %c0_13] : memref<128x128xbf16, #tpu.memory_space<vmem>>, vector<128x128xbf16>
    %cst_14 = arith.constant dense<0.000000e+00> : vector<8x128xf32>
    %27 = tpu.matmul %25, %26, %cst_14 {dimension_numbers = #tpu.dot_dimension_numbers<[1], [0], [0], [1], [0, 0, 1, 1], [], []>} : vector<8x128xbf16>, vector<128x128xbf16>, vector<8x128xf32> -> vector<8x128xf32>
    %c0_15 = arith.constant 0 : index
    %c0_16 = arith.constant 0 : index
    %28 = vector.load %arg5[%c0_15, %c0_16] : memref<1x128xf32, #tpu.memory_space<vmem>>, vector<1x128xf32>
    %c0_17 = arith.constant 0 : index
    %c0_18 = arith.constant 0 : index
    %29 = vector.load %arg6[%c0_17, %c0_18] : memref<1x128xf32, #tpu.memory_space<vmem>>, vector<1x128xf32>
    %cst_19 = arith.constant dense<0.000000e+00> : vector<128xf32>
    %30 = vector.multi_reduction <add>, %27, %cst_19 [0] : vector<8x128xf32> to vector<128xf32>
    %31 = vector.shape_cast %30 : vector<128xf32> to vector<1x128xf32>
    %cst_20 = arith.constant 1.250000e-01 : f32
    %32 = vector.broadcast %cst_20 : f32 to vector<1x128xf32>
    %33 = arith.mulf %31, %32 : vector<1x128xf32>
    %34 = vector.broadcast %33 : vector<1x128xf32> to vector<8x128xf32>
    %35 = arith.subf %27, %34 : vector<8x128xf32>
    %36 = arith.mulf %35, %35 : vector<8x128xf32>
    %cst_21 = arith.constant dense<0.000000e+00> : vector<128xf32>
    %37 = vector.multi_reduction <add>, %36, %cst_21 [0] : vector<8x128xf32> to vector<128xf32>
    %38 = vector.shape_cast %37 : vector<128xf32> to vector<1x128xf32>
    %cst_22 = arith.constant 1.250000e-01 : f32
    %39 = vector.broadcast %cst_22 : f32 to vector<1x128xf32>
    %40 = arith.mulf %38, %39 : vector<1x128xf32>
    %cst_23 = arith.constant 9.99999974E-6 : f32
    %41 = vector.broadcast %cst_23 : f32 to vector<1x128xf32>
    %42 = arith.addf %40, %41 : vector<1x128xf32>
    %43 = math.rsqrt %42 : vector<1x128xf32>
    %44 = vector.broadcast %43 : vector<1x128xf32> to vector<8x128xf32>
    %45 = arith.mulf %35, %44 : vector<8x128xf32>
    %46 = vector.broadcast %28 : vector<1x128xf32> to vector<8x128xf32>
    %47 = arith.mulf %45, %46 : vector<8x128xf32>
    %48 = vector.broadcast %29 : vector<1x128xf32> to vector<8x128xf32>
    %49 = arith.addf %47, %48 : vector<8x128xf32>
    %50 = arith.negf %49 : vector<8x128xf32>
    %51 = math.exp %50 : vector<8x128xf32>
    %cst_24 = arith.constant 1.000000e+00 : f32
    %52 = vector.broadcast %cst_24 : f32 to vector<8x128xf32>
    %53 = arith.addf %52, %51 : vector<8x128xf32>
    %54 = arith.divf %52, %53 : vector<8x128xf32>
    %55 = arith.mulf %24, %54 : vector<8x128xf32>
    %c0_25 = arith.constant 0 : index
    %c0_26 = arith.constant 0 : index
    %56 = vector.load %arg7[%c0_25, %c0_26] : memref<8x128xf32, #tpu.memory_space<vmem>>, vector<8x128xf32>
    tpu.vector_store %arg7[%c0_25, %c0_26], %55 {strides = array<i32>} : memref<8x128xf32, #tpu.memory_space<vmem>>, vector<8x128xf32>,
    return
  }
}

module attributes {stable_mosaic.version = 11 : i64} {
  func.func @_vlad_bn_kernel(%arg0: i32, %arg1: memref<1x128x64xf32, #tpu.memory_space<vmem>>, %arg2: memref<1x1x64xf32, #tpu.memory_space<vmem>>, %arg3: memref<16x128xbf16, #tpu.memory_space<vmem>>, %arg4: memref<16x128xf32, #tpu.memory_space<vmem>>, %arg5: memref<16x1xf32, #tpu.memory_space<vmem>>, %arg6: memref<16x1xf32, #tpu.memory_space<vmem>>, %arg7: memref<16x1xf32, #tpu.memory_space<vmem>>, %arg8: memref<16x1xf32, #tpu.memory_space<vmem>>, %arg9: memref<1x16x128xbf16, #tpu.memory_space<vmem>>) attributes {dimension_semantics = [#tpu.dimension_semantics<parallel>], iteration_bounds = array<i64: 8>, scalar_prefetch = 0 : i64, scratch_operands = 0 : i64, tpu.core_type = #tpu.core_type<tc>, window_params = [{transform_indices = @transform_0, window_bounds = array<i64: 1, 128, 64>}, {transform_indices = @transform_1, window_bounds = array<i64: 1, 1, 64>}, {pipeline_mode = #tpu.pipeline_mode<synchronous>, transform_indices = @transform_2, window_bounds = array<i64: 16, 128>}, {pipeline_mode = #tpu.pipeline_mode<synchronous>, transform_indices = @transform_3, window_bounds = array<i64: 16, 128>}, {pipeline_mode = #tpu.pipeline_mode<synchronous>, transform_indices = @transform_4, window_bounds = array<i64: 16, 1>}, {pipeline_mode = #tpu.pipeline_mode<synchronous>, transform_indices = @transform_5, window_bounds = array<i64: 16, 1>}, {pipeline_mode = #tpu.pipeline_mode<synchronous>, transform_indices = @transform_6, window_bounds = array<i64: 16, 1>}, {pipeline_mode = #tpu.pipeline_mode<synchronous>, transform_indices = @transform_7, window_bounds = array<i64: 16, 1>}, {transform_indices = @transform_8, window_bounds = array<i64: 1, 16, 128>}]} {
    %c0 = arith.constant 0 : index
    %c0_0 = arith.constant 0 : index
    %c0_1 = arith.constant 0 : index
    %0 = vector.load %arg1[%c0, %c0_0, %c0_1] : memref<1x128x64xf32, #tpu.memory_space<vmem>>, vector<1x128x64xf32>
    %1 = vector.shape_cast %0 : vector<1x128x64xf32> to vector<128x64xf32>
    %2 = arith.truncf %1 : vector<128x64xf32> to vector<128x64xbf16>
    %c0_2 = arith.constant 0 : index
    %c0_3 = arith.constant 0 : index
    %c0_4 = arith.constant 0 : index
    %3 = vector.load %arg2[%c0_2, %c0_3, %c0_4] : memref<1x1x64xf32, #tpu.memory_space<vmem>>, vector<1x1x64xf32>
    %4 = vector.shape_cast %3 : vector<1x1x64xf32> to vector<1x64xf32>
    %c0_5 = arith.constant 0 : index
    %c0_6 = arith.constant 0 : index
    %5 = vector.load %arg3[%c0_5, %c0_6] : memref<16x128xbf16, #tpu.memory_space<vmem>>, vector<16x128xbf16>
    %cst = arith.constant dense<0.000000e+00> : vector<16x64xf32>
    %6 = tpu.matmul %5, %2, %cst {dimension_numbers = #tpu.dot_dimension_numbers<[1], [0], [0], [1], [0, 0, 1, 1], [], []>} : vector<16x128xbf16>, vector<128x64xbf16>, vector<16x64xf32> -> vector<16x64xf32>
    %c0_7 = arith.constant 0 : index
    %c0_8 = arith.constant 0 : index
    %7 = vector.load %arg5[%c0_7, %c0_8] : memref<16x1xf32, #tpu.memory_space<vmem>>, vector<16x1xf32>
    %8 = vector.broadcast %7 : vector<16x1xf32> to vector<16x64xf32>
    %9 = arith.subf %6, %8 : vector<16x64xf32>
    %c0_9 = arith.constant 0 : index
    %c0_10 = arith.constant 0 : index
    %10 = vector.load %arg6[%c0_9, %c0_10] : memref<16x1xf32, #tpu.memory_space<vmem>>, vector<16x1xf32>
    %11 = vector.broadcast %10 : vector<16x1xf32> to vector<16x64xf32>
    %12 = arith.mulf %9, %11 : vector<16x64xf32>
    %c0_11 = arith.constant 0 : index
    %c0_12 = arith.constant 0 : index
    %13 = vector.load %arg7[%c0_11, %c0_12] : memref<16x1xf32, #tpu.memory_space<vmem>>, vector<16x1xf32>
    %14 = vector.broadcast %13 : vector<16x1xf32> to vector<16x64xf32>
    %15 = arith.mulf %12, %14 : vector<16x64xf32>
    %c0_13 = arith.constant 0 : index
    %c0_14 = arith.constant 0 : index
    %16 = vector.load %arg8[%c0_13, %c0_14] : memref<16x1xf32, #tpu.memory_space<vmem>>, vector<16x1xf32>
    %17 = vector.broadcast %16 : vector<16x1xf32> to vector<16x64xf32>
    %18 = arith.addf %15, %17 : vector<16x64xf32>
    %cst_15 = arith.constant dense<0xFF800000> : vector<64xf32>
    %19 = vector.multi_reduction <maximumf>, %18, %cst_15 [0] : vector<16x64xf32> to vector<64xf32>
    %20 = vector.shape_cast %19 : vector<64xf32> to vector<1x64xf32>
    %21 = vector.broadcast %20 : vector<1x64xf32> to vector<16x64xf32>
    %22 = arith.subf %18, %21 : vector<16x64xf32>
    %23 = math.exp %22 : vector<16x64xf32>
    %cst_16 = arith.constant dense<0.000000e+00> : vector<64xf32>
    %24 = vector.multi_reduction <add>, %23, %cst_16 [0] : vector<16x64xf32> to vector<64xf32>
    %25 = vector.shape_cast %24 : vector<64xf32> to vector<1x64xf32>
    %26 = tpu.reciprocal %25 {approx = true} : vector<1x64xf32> -> vector<1x64xf32>
    %27 = vector.broadcast %26 : vector<1x64xf32> to vector<16x64xf32>
    %28 = arith.mulf %23, %27 : vector<16x64xf32>
    %29 = vector.broadcast %4 : vector<1x64xf32> to vector<16x64xf32>
    %30 = arith.mulf %28, %29 : vector<16x64xf32>
    %cst_17 = arith.constant dense<0.000000e+00> : vector<16xf32>
    %31 = vector.multi_reduction <add>, %30, %cst_17 [1] : vector<16x64xf32> to vector<16xf32>
    %32 = vector.shape_cast %31 : vector<16xf32> to vector<16x1xf32>
    %33 = arith.truncf %30 : vector<16x64xf32> to vector<16x64xbf16>
    %cst_18 = arith.constant dense<0.000000e+00> : vector<16x128xf32>
    %34 = tpu.matmul %33, %2, %cst_18 {dimension_numbers = #tpu.dot_dimension_numbers<[1], [1], [0], [0], [0, 0, 1, 0], [], []>} : vector<16x64xbf16>, vector<128x64xbf16>, vector<16x128xf32> -> vector<16x128xf32>
    %c0_19 = arith.constant 0 : index
    %c0_20 = arith.constant 0 : index
    %35 = vector.load %arg4[%c0_19, %c0_20] : memref<16x128xf32, #tpu.memory_space<vmem>>, vector<16x128xf32>
    %36 = vector.broadcast %32 : vector<16x1xf32> to vector<16x128xf32>
    %37 = arith.mulf %36, %35 : vector<16x128xf32>
    %38 = arith.subf %34, %37 : vector<16x128xf32>
    %39 = arith.mulf %38, %38 : vector<16x128xf32>
    %cst_21 = arith.constant dense<0.000000e+00> : vector<16xf32>
    %40 = vector.multi_reduction <add>, %39, %cst_21 [1] : vector<16x128xf32> to vector<16xf32>
    %41 = vector.shape_cast %40 : vector<16xf32> to vector<16x1xf32>
    %cst_22 = arith.constant 1.000000e-24 : f32
    %42 = vector.broadcast %cst_22 : f32 to vector<16x1xf32>
    %43 = arith.maximumf %41, %42 : vector<16x1xf32>
    %44 = math.rsqrt %43 : vector<16x1xf32>
    %45 = vector.broadcast %44 : vector<16x1xf32> to vector<16x128xf32>
    %46 = arith.mulf %38, %45 : vector<16x128xf32>
    %47 = arith.mulf %46, %46 : vector<16x128xf32>
    %cst_23 = arith.constant dense<0.000000e+00> : vector<16xf32>
    %48 = vector.multi_reduction <add>, %47, %cst_23 [1] : vector<16x128xf32> to vector<16xf32>
    %49 = vector.shape_cast %48 : vector<16xf32> to vector<16x1xf32>
    %cst_24 = arith.constant dense<0.000000e+00> : vector<1xf32>
    %50 = vector.multi_reduction <add>, %49, %cst_24 [0] : vector<16x1xf32> to vector<1xf32>
    %51 = vector.shape_cast %50 : vector<1xf32> to vector<1x1xf32>
    %cst_25 = arith.constant 1.000000e-24 : f32
    %52 = vector.broadcast %cst_25 : f32 to vector<1x1xf32>
    %53 = arith.maximumf %51, %52 : vector<1x1xf32>
    %54 = math.rsqrt %53 : vector<1x1xf32>
    %55 = vector.broadcast %54 : vector<1x1xf32> to vector<16x128xf32>
    %56 = arith.mulf %46, %55 : vector<16x128xf32>
    %57 = arith.truncf %56 : vector<16x128xf32> to vector<16x128xbf16>
    %c0_26 = arith.constant 0 : index
    %c0_27 = arith.constant 0 : index
    %c0_28 = arith.constant 0 : index
    %58 = vector.load %arg9[%c0_26, %c0_27, %c0_28] : memref<1x16x128xbf16, #tpu.memory_space<vmem>>, vector<1x16x128xbf16>
    %59 = vector.shape_cast %58 : vector<1x16x128xbf16> to vector<16x128xbf16>
    %60 = vector.shape_cast %57 : vector<16x128xbf16> to vector<1x16x128xbf16>
    tpu.vector_store %arg9[%c0_26, %c0_27, %c0_28], %60 {strides = array<i32>} : memref<1x16x128xbf16, #tpu.memory_space<vmem>>, vector<1x16x128xbf16>,
    return
  }
  func.func @transform_0(%arg0: i32) -> (i32, i32, i32) {
    %c0_i32 = arith.constant 0 : i32
    %c0_i32_0 = arith.constant 0 : i32
    %c0_i32_1 = arith.constant 0 : i32
    return %arg0, %c0_i32, %c0_i32_0 : i32, i32, i32
  }
  func.func @transform_1(%arg0: i32) -> (i32, i32, i32) {
    %c0_i32 = arith.constant 0 : i32
    %c0_i32_0 = arith.constant 0 : i32
    %c0_i32_1 = arith.constant 0 : i32
    return %arg0, %c0_i32, %c0_i32_0 : i32, i32, i32
  }
  func.func @transform_2(%arg0: i32) -> (i32, i32) {
    %c0_i32 = arith.constant 0 : i32
    %c0_i32_0 = arith.constant 0 : i32
    %c0_i32_1 = arith.constant 0 : i32
    return %c0_i32, %c0_i32_0 : i32, i32
  }
  func.func @transform_3(%arg0: i32) -> (i32, i32) {
    %c0_i32 = arith.constant 0 : i32
    %c0_i32_0 = arith.constant 0 : i32
    %c0_i32_1 = arith.constant 0 : i32
    return %c0_i32, %c0_i32_0 : i32, i32
  }
  func.func @transform_4(%arg0: i32) -> (i32, i32) {
    %c0_i32 = arith.constant 0 : i32
    %c0_i32_0 = arith.constant 0 : i32
    %c0_i32_1 = arith.constant 0 : i32
    return %c0_i32, %c0_i32_0 : i32, i32
  }
  func.func @transform_5(%arg0: i32) -> (i32, i32) {
    %c0_i32 = arith.constant 0 : i32
    %c0_i32_0 = arith.constant 0 : i32
    %c0_i32_1 = arith.constant 0 : i32
    return %c0_i32, %c0_i32_0 : i32, i32
  }
  func.func @transform_6(%arg0: i32) -> (i32, i32) {
    %c0_i32 = arith.constant 0 : i32
    %c0_i32_0 = arith.constant 0 : i32
    %c0_i32_1 = arith.constant 0 : i32
    return %c0_i32, %c0_i32_0 : i32, i32
  }
  func.func @transform_7(%arg0: i32) -> (i32, i32) {
    %c0_i32 = arith.constant 0 : i32
    %c0_i32_0 = arith.constant 0 : i32
    %c0_i32_1 = arith.constant 0 : i32
    return %c0_i32, %c0_i32_0 : i32, i32
  }
  func.func @transform_8(%arg0: i32) -> (i32, i32, i32) {
    %c0_i32 = arith.constant 0 : i32
    %c0_i32_0 = arith.constant 0 : i32
    %c0_i32_1 = arith.constant 0 : i32
    return %arg0, %c0_i32, %c0_i32_0 : i32, i32, i32
  }
}

</mosaic_0001>

<bundles_post_ra>
// kernel: netvlad_mask_forward.3
= control target key start
LH: loop header
LB: loop body
LE: loop exit
PB: predicated region body
PF: predicated region fallthrough
CT: control target
= control target key end

     0   :  { %s499_s15 = smov 0   ;;  %s572_s0 = inlined_call_operand.vmem [shape: f32[8,128,64], index: 0, kind: input, shape index: {}]   ;;  %s573_s1 = inlined_call_operand.vmem [shape: f32[8,1,64], index: 1, kind: input, shape index: {}]   ;;  %s574_s2 = inlined_call_operand.vmem [shape: bf16[16,128], index: 2, kind: input, shape index: {}]   ;;  %s575_s3 = inlined_call_operand.vmem [shape: f32[16,1], index: 3, kind: output, shape index: {0}]   ;;  %s576_s4 = inlined_call_operand.vmem [shape: f32[16,1], index: 4, kind: output, shape index: {1}]  }
   0x1 LB: > { %s505_s16 = sadd.s32 4294967295, %s469_s15   ;;  %p407_p0 = scmp.ge.s32.totalorder %s469_s15, 1  ;;  %s469_s15 = sphi %s499_s15, %s15_s15  }
   0x2   : > { %p163_p1 = scmp.lt.s32.totalorder %s469_s15, 9 }
   0x4   : > { %p164_p2 = pnand %p407_p0, %p163_p1 }
   0x5   : > { %p187_p3 = scmp.lt.s32.totalorder (!%p164_p2), %s505_s16, 7  ;;  %p410_p4 = scmp.ne.s32.totalorder (!%p164_p2), %s505_s16, 0 }
   0x6   : > { %167 = sbr.rel (%p164_p2) target bundleno = 468 (0x1d4), region = 32 }
   0xd   : > { %s511_s17 = scalar_select %p187_p3, %s505_s16, 7 }
   0xe   : > { %199 = sbr.rel (%p410_p4) target bundleno = 21 (0x15), region = 36  ;;  %vm200_vm0 = vcmask (!%p410_p4), 7168   ;;  %vm205_vm1 = vcmask (!%p410_p4), 0   ;;  %v471_v0 = vmov (!%p410_p4), 0.0  }
   0xf   : > { %s415_s18 = sshll.u32 %s511_s17, 7  ;;  %s194_s21 = scalar_lea.vmem %s573_s1, %s511_s17  ;;  %201 = vst.msk [vmem:[#allocation2] sm:$0xff] (!%p410_p4), %vm200_vm0, %v471_v0  ;;  %202 = vst.msk [vmem:[#allocation2 + $0x8] sm:$0xff] (!%p410_p4), %vm200_vm0, %v471_v0 }
  0x10   : > { %s521_s24 = scalar_lea.vmem %s572_s0, %s415_s18  ;;  %203 = vst.msk [vmem:[#allocation3] sm:$0xff] (!%p410_p4), %vm200_vm0, %v471_v0  ;;  %204 = vst.msk [vmem:[#allocation3 + $0x8] sm:$0xff] (!%p410_p4), %vm200_vm0, %v471_v0 }
  0x11   : > { %206 = vst.msk [vmem:[#allocation4] sm:$0x1] (!%p410_p4), %vm205_vm1, %v471_v0 }
  0x15 PF: > { %v207_v1 = vld [vmem:[%s521_s24] sm:$0xff]  ;;  %v208_v2 = vld [vmem:[%s521_s24 + $0x8] sm:$0xff]  ;;  %v209_v3 = vld [vmem:[%s521_s24 + $0x10] sm:$0xff]  ;;  %v472_v4 = vmov 0.0   ;;  %vm473_vm2 = vmmov 0   ;;  %v282_v27 = vlaneseq  ;;  %vm291_vm3 = vcmask 523264  }
  0x16   : > { %425 = vmatprep.subr.bf16.mxu0 %v472_v4  ;;  %v223_v5 = vpack.c.bf16 %v208_v2, %v207_v1  ;;  %v210_v6 = vld [vmem:[%s521_s24 + $0x18] sm:$0xff]  ;;  %441 = vmatprep.mubr.msk.bf16.mxu0 %vm473_vm2, %v472_v4  ;;  %v211_v8 = vld [vmem:[%s521_s24 + $0x20] sm:$0xff]  ;;  %v212_v9 = vld [vmem:[%s521_s24 + $0x28] sm:$0xff]  ;;  %vm318_vm4 = vcmask 516096   ;;  %vm300_vm5 = vcmask 7168   ;;  %vm323_vm6 = vcmask 0  }
  0x17   : > { %v224_v7 = vpack.c.bf16 %v210_v6, %v209_v3  ;;  %v225_v10 = vpack.c.bf16 %v212_v9, %v211_v8  ;;  %v213_v11 = vld [vmem:[%s521_s24 + $0x30] sm:$0xff]  ;;  %v214_v12 = vld [vmem:[%s521_s24 + $0x38] sm:$0xff]  ;;  %v215_v14 = vld [vmem:[%s521_s24 + $0x40] sm:$0xff]  ;;  %v283_v28 = vshrl.u32 %v282_v27, 7  ;;  %p412_p5 = scmp.ne.s32.totalorder %s505_s16, 7 }
  0x18   : > { %426 = vmatpush3.bf16.msra.mxu0 %v223_v5  ;;  %v226_v13 = vpack.c.bf16 %v214_v12, %v213_v11  ;;  %v216_v15 = vld [vmem:[%s521_s24 + $0x48] sm:$0xff]  ;;  %v217_v17 = vld [vmem:[%s521_s24 + $0x50] sm:$0xff]  ;;  %v218_v18 = vld [vmem:[%s521_s24 + $0x58] sm:$0xff] }
  0x19   : > { %427 = vmatprep.subr.bf16.mxu0 %v472_v4  ;;  %v227_v16 = vpack.c.bf16 %v216_v15, %v215_v14  ;;  %v228_v19 = vpack.c.bf16 %v218_v18, %v217_v17  ;;  %v219_v20 = vld [vmem:[%s521_s24 + $0x60] sm:$0xff]  ;;  %v220_v21 = vld [vmem:[%s521_s24 + $0x68] sm:$0xff]  ;;  %v221_v23 = vld [vmem:[%s521_s24 + $0x70] sm:$0xff]  ;;  %v284_v29 = vsub.s32 0, %v283_v28 }
  0x1a   : > { %v229_v22 = vpack.c.bf16 %v220_v21, %v219_v20  ;;  %v222_v24 = vld [vmem:[%s521_s24 + $0x78] sm:$0xff]  ;;  %v456_v26 = vld [vmem:[%s574_s2] sm:$0xff]   ;;  %v303_v47 = vld [vmem:[#allocation3] sm:$0xff] }
  0x1b   : > { %v230_v25 = vpack.c.bf16 %v222_v24, %v221_v23  ;;  %v231_v30 = vld [vmem:[%s194_s21] sm:$0x1]  ;;  %v290_v50 = vld [vmem:[#allocation2 + $0x8] sm:$0xff]  ;;  %v304_v53 = vld [vmem:[#allocation3 + $0x8] sm:$0xff] }
  0x1c   : > { %428 = vmatpush3.bf16.msra.mxu0 %v224_v7  ;;  %v285_v31 = vrot.slane %v231_v30, %v284_v29  ;;  %v319_v44 = vsel %vm318_vm4, %v231_v30, 0.0  ;;  %v289_v45 = vld [vmem:[#allocation2] sm:$0xff] }
  0x1d   : > { %429 = vmatprep.subr.bf16.mxu0 %v472_v4  ;;  %v317_v56 = vld [vmem:[#allocation4] sm:$0x1] }
  0x20   : > { %430 = vmatpush3.bf16.msra.mxu0 %v225_v10 }
  0x21   : > { %431 = vmatprep.subr.bf16.mxu0 %v472_v4 }
  0x24   : > { %432 = vmatpush3.bf16.msra.mxu0 %v226_v13 }
  0x25   : > { %433 = vmatprep.subr.bf16.mxu0 %v472_v4 }
  0x28   : > { %434 = vmatpush3.bf16.msra.mxu0 %v227_v16 }
  0x29   : > { %435 = vmatprep.subr.bf16.mxu0 %v472_v4 }
  0x2c   : > { %436 = vmatpush3.bf16.msra.mxu0 %v228_v19 }
  0x2d   : > { %437 = vmatprep.subr.bf16.mxu0 %v472_v4 }
  0x30   : > { %438 = vmatpush3.bf16.msra.mxu0 %v229_v22 }
  0x31   : > { %439 = vmatprep.subr.bf16.mxu0 %v472_v4 }
  0x34   : > { %440 = vmatpush3.bf16.msra.mxu0 %v230_v25 }
  0x37   : > { %442 = vmatmul.mubr.bf16.vlgmr.msra.gmra.mrb[0].mxu0 %v456_v26 }
 0x10a   : > { %v274_v32 = vpop.f32.mrb[0].mxu0 }
 0x10b   : > { %v443_v33 = vpop.f32.mrb[1].mxu0  ;;  %v287_v34 = vmul.f32 %v285_v31, %v274_v32 }
 0x10c   : > { %v277_v35 = vpop.f32.mrb[2].mxu0 }
 0x10d   : > { %v288_v36 = vmul.f32 %v285_v31, %v277_v35  ;;  %v444_v37 = vpop.f32.mrb[3].mxu0  ;;  %v292_v38 = vsel %vm291_vm3, %v287_v34, 0.0  ;;  %v305_v39 = vmul.f32 %v287_v34, %v274_v32 }
 0x10e   : > { %293 = vadd.xlane.f32.xlu0 %v292_v38 }
 0x10f   : > { %v306_v40 = vmul.f32 %v288_v36, %v277_v35  ;;  %v307_v41 = vsel %vm291_vm3, %v305_v39, 0.0  ;;  %v295_v42 = vsel %vm291_vm3, %v288_v36, 0.0 }
 0x110   : > { %308 = vadd.xlane.f32.xlu1 %v307_v41 }
 0x111   : > { %v310_v43 = vsel %vm291_vm3, %v306_v40, 0.0 }
 0x112   : > { %296 = vadd.xlane.f32.xlu0 %v295_v42 }
 0x114   : > { %311 = vadd.xlane.f32.xlu1 %v310_v43 }
 0x116   : > { %320 = vadd.xlane.f32.xlu0 %v319_v44 }
 0x19b   : > { %v294_v46 = vpop.xlane.xlu0 %293 }
 0x19c   : > { %v298_v48 = vadd.f32 %v294_v46, %v289_v45 }
 0x19d   : > { %v309_v49 = vpop.xlane.xlu1 %308 }
 0x19e   : > { %301 = vst.msk [vmem:[#allocation2] sm:$0xff] %vm300_vm5, %v298_v48  ;;  %v313_v51 = vadd.f32 %v309_v49, %v303_v47 }
 0x19f   : > { %v297_v52 = vpop.xlane.xlu0 %296 }
 0x1a0   : > { %315 = vst.msk [vmem:[#allocation3] sm:$0xff] %vm300_vm5, %v313_v51  ;;  %v299_v54 = vadd.f32 %v297_v52, %v290_v50  ;;  %328 = sbr.rel (%p412_p5) target bundleno = 468 (0x1d4), region = 40 }
 0x1a1   : > { %v312_v55 = vpop.xlane.xlu1 %311 }
 0x1a2   : > { %302 = vst.msk [vmem:[#allocation2 + $0x8] sm:$0xff] %vm300_vm5, %v299_v54  ;;  %v314_v57 = vadd.f32 %v312_v55, %v304_v53 }
 0x1a3   : > { %v321_v58 = vpop.xlane.xlu0 %320 }
 0x1a4   : > { %316 = vst.msk [vmem:[#allocation3 + $0x8] sm:$0xff] %vm300_vm5, %v314_v57  ;;  %v322_v59 = vadd.f32 %v321_v58, %v317_v56 }
 0x1a5   : > { %v333_v62 = vld [vmem:[#allocation2] sm:$0xff] (!%p412_p5) }
 0x1a6   : > { %324 = vst.msk [vmem:[#allocation4] sm:$0x1] %vm323_vm6, %v322_v59 }
 0x1a7   : > { %v343_v1 = vld [vmem:[#allocation3] sm:$0xff] }
 0x1a9   : > { %v334_v0 = vld [vmem:[#allocation2 + $0x8] sm:$0xff] }
 0x1ab   : > { %v344_v2 = vld [vmem:[#allocation3 + $0x8] sm:$0xff] }
 0x1ad   : > { %v329_v60 = vld [vmem:[#allocation4] sm:$0x1] }
 0x1ae   : > { %v330_v61 = vmax.f32 %v329_v60, 1.0 }
 0x1b0   : > { %457 = vrcp.f32 %v330_v61 }
 0x1ba   : > { %v458_v63 = vpop.eup %457 }
 0x1bb   : > { %v339_v3 = vrot.slane %v458_v63, %v284_v29 }
 0x1bd   : > { %v341_v4 = vmul.f32 %v339_v3, %v333_v62  ;;  %v342_v5 = vmul.f32 %v339_v3, %v334_v0  ;;  %v345_v6 = vmul.f32 %v343_v1, %v339_v3  ;;  %v346_v7 = vmul.f32 %v344_v2, %v339_v3 }
 0x1bf   : > { %v347_v8 = vmul.f32 %v341_v4, %v341_v4  ;;  %353 = vst.msk [vmem:[%s575_s3] sm:$0xff] %vm300_vm5, %v341_v4  ;;  %v348_v9 = vmul.f32 %v342_v5, %v342_v5  ;;  %354 = vst.msk [vmem:[%s575_s3 + $0x8] sm:$0xff] %vm300_vm5, %v342_v5 }
 0x1c1   : > { %v349_v10 = vsub.f32 %v345_v6, %v347_v8  ;;  %v350_v11 = vsub.f32 %v346_v7, %v348_v9 }
 0x1c3   : > { %v351_v12 = vmax.f32 %v349_v10, 0.0  ;;  %v352_v13 = vmax.f32 %v350_v11, 0.0 }
 0x1c5   : > { %v355_v14 = vadd.f32 1e-05, %v351_v12  ;;  %v356_v15 = vadd.f32 1e-05, %v352_v13 }
 0x1c7   : > { %459 = vrsqrt.f32 %v355_v14 }
 0x1c8   : > { %461 = vrsqrt.f32 %v356_v15 }
 0x1d1   : > { %v460_v16 = vpop.eup %459 }
 0x1d2   : > { %v462_v17 = vpop.eup %461  ;;  %359 = vst.msk [vmem:[%s576_s4] sm:$0xff] %vm300_vm5, %v460_v16 }
 0x1d3   : > { %360 = vst.msk [vmem:[%s576_s4 + $0x8] sm:$0xff] %vm300_vm5, %v462_v17 }
 0x1d4 PF: > { %s15_s15 = sadd.s32 1, %s469_s15  }
 0x1d5   : > { %p12_p6 = scmp.ge.s32.totalorder %s15_s15, 10  }
 0x1d7   :  { %14 = sbr.rel (!%p12_p6) target bundleno = 1 (0x1), region = 77 }

// kernel: netvlad_mask_forward.4
= control target key start
LH: loop header
LB: loop body
LE: loop exit
PB: predicated region body
PF: predicated region fallthrough
CT: control target
= control target key end

     0   :  { %s836_s27 = smov 0   ;;  %s945_s0 = inlined_call_operand.vmem [shape: f32[8,128,64], index: 0, kind: input, shape index: {}]   ;;  %s946_s1 = inlined_call_operand.vmem [shape: f32[8,1,64], index: 1, kind: input, shape index: {}]   ;;  %s947_s2 = inlined_call_operand.vmem [shape: bf16[16,128], index: 2, kind: input, shape index: {}]   ;;  %s948_s3 = inlined_call_operand.vmem [shape: f32[16,128], index: 3, kind: input, shape index: {}]   ;;  %s949_s4 = inlined_call_operand.vmem [shape: f32[16,1], index: 4, kind: input, shape index: {}]   ;;  %s950_s5 = inlined_call_operand.vmem [shape: f32[16,1], index: 5, kind: input, shape index: {}]   ;;  %s951_s6 = inlined_call_operand.vmem [shape: f32[16,1], index: 6, kind: input, shape index: {}]   ;;  %s952_s7 = inlined_call_operand.vmem [shape: f32[16,1], index: 7, kind: input, shape index: {}]   ;;  %s953_s8 = inlined_call_operand.vmem [shape: bf16[8,16,128], index: 8, kind: output, shape index: {}]  }
   0x1 LB: > { %s671_s28 = sadd.s32 4294967295, %s786_s27   ;;  %p675_p0 = scmp.ge.s32.totalorder %s786_s27, 1  ;;  %s786_s27 = sphi %s836_s27, %s18_s27  }
   0x2   : > { %p270_p1 = scmp.lt.s32.totalorder %s786_s27, 9 }
   0x4   : > { %p271_p2 = pnand %p675_p0, %p270_p1 }
   0x5   : > { %p307_p3 = scmp.lt.s32.totalorder (!%p271_p2), %s671_s28, 7  ;;  %v788_v0 = vmov (!%p271_p2), 0.0   ;;  %vm789_vm0 = vmmov (!%p271_p2), 0   ;;  %v409_v1 = vld [vmem:[%s950_s5] sm:$0xff] (!%p271_p2)  ;;  %v790_v3 = vmov (!%p271_p2), 0   ;;  %v410_v4 = vld [vmem:[%s950_s5 + $0x8] sm:$0xff] (!%p271_p2) }
   0x6   : > { %274 = sbr.rel (%p271_p2) target bundleno = 888 (0x378), region = 52  ;;  %714 = vmatprep.subr.bf16.mxu0 (!%p271_p2), %v788_v0  ;;  %730 = vmatprep.mubr.msk.bf16.mxu0 (!%p271_p2), %vm789_vm0, %v788_v0  ;;  %v395_v2 = vld [vmem:[%s949_s4] sm:$0xff] (!%p271_p2)  ;;  %v396_v5 = vld [vmem:[%s949_s4 + $0x8] sm:$0xff] (!%p271_p2)  ;;  %vm451_vm1 = vcmask (!%p271_p2), 523264  }
   0x7   : > { %766 = vset.pattern.permute.xlu1 (!%p271_p2), %v790_v3  ;;  %765 = vset.pattern.permute.xlu0 (!%p271_p2), %v790_v3  ;;  %v424_v11 = vld [vmem:[%s951_s6 + $0x8] sm:$0xff] (!%p271_p2)  ;;  %v423_v12 = vld [vmem:[%s951_s6] sm:$0xff] (!%p271_p2) }
   0x8   : > { %413 = vperm.xlu1 (!%p271_p2), %766, %v409_v1   ;;  %399 = vperm.xlu0 (!%p271_p2), %765, %v395_v2   ;;  %v438_v16 = vld [vmem:[%s952_s7 + $0x8] sm:$0xff] (!%p271_p2)  ;;  %v437_v17 = vld [vmem:[%s952_s7] sm:$0xff] (!%p271_p2) }
   0x9   : > { %734 = vmatprep.subr.bf16.mxu1 (!%p271_p2), %v788_v0  ;;  %750 = vmatprep.mubr.msk.bf16.mxu1 (!%p271_p2), %vm789_vm0, %v788_v0  ;;  %v767_v34 = vld [vmem:[%s947_s2] sm:$0xff] (!%p271_p2)  }
   0xc   : > { %418 = vperm.xlu1 (!%p271_p2), %766, %v410_v4   ;;  %404 = vperm.xlu0 (!%p271_p2), %765, %v396_v5  }
   0xd   : > { %s955_s28 = smov (!%p307_p3, %s671_s28), 7 }
   0xe   : > { %s687_s11 = sshll.u32 %s955_s28, 7  ;;  %s688_s16 = sshll.u32 %s955_s28, 3 }
   0xf   : > { %s866_s18 = scalar_lea.vmem %s945_s0, %s687_s11  ;;  %s314_s11 = scalar_lea.vmem %s946_s1, %s955_s28 }
  0x10   : > { %v321_v6 = vld [vmem:[%s866_s18] sm:$0xff]  ;;  %v322_v7 = vld [vmem:[%s866_s18 + $0x8] sm:$0xff]  ;;  %v323_v8 = vld [vmem:[%s866_s18 + $0x10] sm:$0xff]  ;;  %432 = vperm.xlu1 %766, %v424_v11   ;;  %427 = vperm.xlu0 %765, %v423_v12   ;;  %s319_s19 = scalar_lea.vmem %s953_s8, %s688_s16 }
  0x11   : > { %v337_v9 = vpack.c.bf16 %v322_v7, %v321_v6  ;;  %v324_v10 = vld [vmem:[%s866_s18 + $0x18] sm:$0xff]  ;;  %v325_v14 = vld [vmem:[%s866_s18 + $0x20] sm:$0xff]  ;;  %v326_v15 = vld [vmem:[%s866_s18 + $0x28] sm:$0xff] }
  0x12   : > { %v338_v13 = vpack.c.bf16 %v324_v10, %v323_v8  ;;  %v339_v18 = vpack.c.bf16 %v326_v15, %v325_v14  ;;  %v327_v19 = vld [vmem:[%s866_s18 + $0x30] sm:$0xff]  ;;  %v328_v20 = vld [vmem:[%s866_s18 + $0x38] sm:$0xff]  ;;  %v329_v22 = vld [vmem:[%s866_s18 + $0x40] sm:$0xff] }
  0x13   : > { %715 = vmatpush3.bf16.msra.mxu0 %v337_v9  ;;  %v340_v21 = vpack.c.bf16 %v328_v20, %v327_v19  ;;  %v330_v23 = vld [vmem:[%s866_s18 + $0x48] sm:$0xff]  ;;  %v331_v25 = vld [vmem:[%s866_s18 + $0x50] sm:$0xff]  ;;  %v332_v26 = vld [vmem:[%s866_s18 + $0x58] sm:$0xff]  ;;  %v498_v35 = vsel %vm451_vm1, %v337_v9, 0 }
  0x14   : > { %716 = vmatprep.subr.bf16.mxu0 %v788_v0  ;;  %446 = vperm.xlu1 %766, %v438_v16   ;;  %v341_v24 = vpack.c.bf16 %v330_v23, %v329_v22  ;;  %v342_v27 = vpack.c.bf16 %v332_v26, %v331_v25  ;;  %v333_v28 = vld [vmem:[%s866_s18 + $0x60] sm:$0xff]  ;;  %v334_v29 = vld [vmem:[%s866_s18 + $0x68] sm:$0xff]  ;;  %v335_v31 = vld [vmem:[%s866_s18 + $0x70] sm:$0xff]  ;;  %v501_v36 = vsel %vm451_vm1, %v338_v13, 0  ;;  %v504_v37 = vsel %vm451_vm1, %v339_v18, 0 }
  0x15   : > { %441 = vperm.xlu0 %765, %v437_v17   ;;  %v343_v30 = vpack.c.bf16 %v334_v29, %v333_v28  ;;  %v336_v32 = vld [vmem:[%s866_s18 + $0x78] sm:$0xff]  ;;  %735 = vmatpush3.bf16.xpose.msra.mxu1 %v498_v35  ;;  %v507_v38 = vsel %vm451_vm1, %v340_v21, 0 }
  0x16   : > { %v344_v33 = vpack.c.bf16 %v336_v32, %v335_v31  ;;  %736 = vmatprep.subr.bf16.mxu1 %v788_v0  ;;  %v510_v39 = vsel %vm451_vm1, %v341_v24, 0  ;;  %v513_v40 = vsel %vm451_vm1, %v342_v27, 0  ;;  %v562_v32 = vld [vmem:[%s948_s3] sm:$0xff] }
  0x17   : > { %717 = vmatpush3.bf16.msra.mxu0 %v338_v13  ;;  %v516_v41 = vsel %vm451_vm1, %v343_v30, 0 }
  0x18   : > { %718 = vmatprep.subr.bf16.mxu0 %v788_v0  ;;  %v519_v42 = vsel %vm451_vm1, %v344_v33, 0 }
  0x1b   : > { %719 = vmatpush3.bf16.msra.mxu0 %v339_v18 }
  0x1c   : > { %720 = vmatprep.subr.bf16.mxu0 %v788_v0 }
  0x1d   : > { %737 = vmatpush3.bf16.xpose.msra.mxu1 %v501_v36 }
  0x1e   : > { %738 = vmatprep.subr.bf16.mxu1 %v788_v0 }
  0x1f   : > { %721 = vmatpush3.bf16.msra.mxu0 %v340_v21 }
  0x20   : > { %722 = vmatprep.subr.bf16.mxu0 %v788_v0 }
  0x23   : > { %723 = vmatpush3.bf16.msra.mxu0 %v341_v24  ;;  %v681_v24 = vld [vmem:[%s314_s11] ss:$0 sm:$0xff] }
  0x24   : > { %724 = vmatprep.subr.bf16.mxu0 %v788_v0 }
  0x25   : > { %739 = vmatpush3.bf16.xpose.msra.mxu1 %v504_v37 }
  0x26   : > { %740 = vmatprep.subr.bf16.mxu1 %v788_v0 }
  0x27   : > { %725 = vmatpush3.bf16.msra.mxu0 %v342_v27 }
  0x28   : > { %726 = vmatprep.subr.bf16.mxu0 %v788_v0 }
  0x2b   : > { %727 = vmatpush3.bf16.msra.mxu0 %v343_v30 }
  0x2c   : > { %728 = vmatprep.subr.bf16.mxu0 %v788_v0 }
  0x2d   : > { %741 = vmatpush3.bf16.xpose.msra.mxu1 %v507_v38 }
  0x2e   : > { %742 = vmatprep.subr.bf16.mxu1 %v788_v0 }
  0x2f   : > { %729 = vmatpush3.bf16.msra.mxu0 %v344_v33 }
  0x32   : > { %731 = vmatmul.mubr.bf16.vlgmr.msra.gmra.mrb[0].mxu0 %v767_v34  ;;  %v563_v34 = vld [vmem:[%s948_s3 + $0x8] sm:$0xff] }
  0x35   : > { %743 = vmatpush3.bf16.xpose.msra.mxu1 %v510_v39 }
  0x36   : > { %744 = vmatprep.subr.bf16.mxu1 %v788_v0 }
  0x3d   : > { %745 = vmatpush3.bf16.xpose.msra.mxu1 %v513_v40 }
  0x3e   : > { %746 = vmatprep.subr.bf16.mxu1 %v788_v0 }
  0x45   : > { %747 = vmatpush3.bf16.xpose.msra.mxu1 %v516_v41 }
  0x46   : > { %748 = vmatprep.subr.bf16.mxu1 %v788_v0 }
  0x4d   : > { %749 = vmatpush3.bf16.xpose.msra.mxu1 %v519_v42 }
  0x87   : > { %v400_v43 = vpop.permute.xlu0 %399  ;;  %v414_v44 = vpop.permute.xlu1 %413 }
  0x8b   : > { %v405_v45 = vpop.permute.xlu0 %404  ;;  %v419_v46 = vpop.permute.xlu1 %418 }
  0x8f   : > { %v428_v47 = vpop.permute.xlu0 %427  ;;  %v433_v51 = vpop.permute.xlu1 %432 }
  0x93   : > { %v447_v61 = vpop.permute.xlu1 %446 }
  0x94   : > { %v442_v58 = vpop.permute.xlu0 %441 }
 0x105   : > { %v388_v48 = vpop.f32.mrb[0].mxu0 }
 0x106   : > { %v407_v49 = vsub.f32 %v388_v48, %v400_v43  ;;  %v732_v50 = vpop.f32.mrb[1].mxu0 }
 0x107   : > { %v391_v52 = vpop.f32.mrb[2].mxu0 }
 0x108   : > { %v421_v53 = vmul.f32 %v414_v44, %v407_v49  ;;  %v408_v54 = vsub.f32 %v391_v52, %v405_v45  ;;  %v733_v55 = vpop.f32.mrb[3].mxu0 }
 0x10a   : > { %v435_v56 = vmul.f32 %v428_v47, %v421_v53  ;;  %v422_v57 = vmul.f32 %v419_v46, %v408_v54 }
 0x10c   : > { %v449_v59 = vadd.f32 %v442_v58, %v435_v56  ;;  %v436_v60 = vmul.f32 %v433_v51, %v422_v57 }
 0x10e   : > { %v450_v62 = vadd.f32 %v447_v61, %v436_v60  ;;  %v452_v63 = vsel %vm451_vm1, %v449_v59, -inf }
 0x110   : > { %v453_v0 = vsel %vm451_vm1, %v450_v62, -inf }
 0x111   : > { %v454_v1 = vmax.f32 %v452_v63, %v453_v0 }
 0x113   : > { %v455_v2 = vrot.slane %v454_v1, 4 }
 0x115   : > { %v456_v3 = vmax.f32 %v454_v1, %v455_v2 }
 0x117   : > { %v457_v4 = vrot.slane %v456_v3, 2 }
 0x119   : > { %v458_v5 = vmax.f32 %v456_v3, %v457_v4 }
 0x11b   : > { %v459_v6 = vrot.slane %v458_v5, 1 }
 0x11d   : > { %v460_v7 = vmax.f32 %v458_v5, %v459_v6 }
 0x11f   : > { %v461_v8 = vsub.f32 %v449_v59, %v460_v7  ;;  %v462_v9 = vsub.f32 %v450_v62, %v460_v7 }
 0x121   : > { %v463_v10 = vmul.f32 1.442695, %v461_v8  ;;  %v465_v11 = vmul.f32 1.442695, %v462_v9 }
 0x123   : > { %768 = vpow2.f32 %v463_v10 }
 0x124   : > { %770 = vpow2.f32 %v465_v11 }
 0x12d   : > { %v769_v12 = vpop.eup %768 }
 0x12e   : > { %v771_v13 = vpop.eup %770  ;;  %v467_v14 = vsel %vm451_vm1, %v769_v12, 0.0 }
 0x12f   : > { %v468_v15 = vsel %vm451_vm1, %v771_v13, 0.0 }
 0x130   : > { %v469_v16 = vadd.f32 %v468_v15, %v467_v14 }
 0x132   : > { %v470_v17 = vrot.slane %v469_v16, 4 }
 0x134   : > { %v471_v18 = vadd.f32 %v470_v17, %v469_v16 }
 0x136   : > { %v472_v19 = vrot.slane %v471_v18, 2 }
 0x138   : > { %v473_v20 = vadd.f32 %v472_v19, %v471_v18 }
 0x13a   : > { %v474_v21 = vrot.slane %v473_v20, 1 }
 0x13c   : > { %v475_v22 = vadd.f32 %v474_v21, %v473_v20 }
 0x13e   : > { %772 = vrcp.f32 %v475_v22 }
 0x148   : > { %v773_v23 = vpop.eup %772 }
 0x149   : > { %v478_v25 = vmul.f32 %v773_v23, %v771_v13  ;;  %v477_v26 = vmul.f32 %v773_v23, %v769_v12 }
 0x14b   : > { %v486_v27 = vmul.f32 %v681_v24, %v478_v25  ;;  %v485_v28 = vmul.f32 %v681_v24, %v477_v26 }
 0x14d   : > { %v490_v29 = vsel %vm451_vm1, %v486_v27, 0.0  ;;  %v487_v30 = vsel %vm451_vm1, %v485_v28, 0.0  ;;  %v493_v31 = vpack.c.bf16 %v486_v27, %v485_v28 }
 0x14e   : > { %491 = vadd.xlane.f32.xlu1 %v490_v29  ;;  %488 = vadd.xlane.f32.xlu0 %v487_v30 }
 0x14f   : > { %751 = vmatmul.mubr.msk.bf16.vlgmr.msra.gmra.mrb[0].mxu1 %vm451_vm1, %v493_v31 }
 0x1db   : > { %v489_v33 = vpop.xlane.xlu0 %488  ;;  %v492_v35 = vpop.xlane.xlu1 %491 }
 0x1dc   : > { %v564_v36 = vmul.f32 %v562_v32, %v489_v33  ;;  %v565_v38 = vmul.f32 %v563_v34, %v492_v35 }
 0x222   : > { %v555_v37 = vpop.f32.mrb[0].mxu1 }
 0x223   : > { %v566_v39 = vsub.f32 %v555_v37, %v564_v36  ;;  %v752_v40 = vpop.f32.mrb[1].mxu1 }
 0x224   : > { %v558_v41 = vpop.f32.mrb[2].mxu1 }
 0x225   : > { %v567_v42 = vsub.f32 %v558_v41, %v565_v38  ;;  %v753_v43 = vpop.f32.mrb[3].mxu1  ;;  %v568_v44 = vmul.f32 %v566_v39, %v566_v39 }
 0x227   : > { %570 = vadd.xlane.f32.xlu0 %v568_v44  ;;  %v569_v45 = vmul.f32 %v567_v42, %v567_v42 }
 0x22b   : > { %572 = vadd.xlane.f32.xlu0 %v569_v45 }
 0x2b4   : > { %v571_v46 = vpop.xlane.xlu0 %570 }
 0x2b5   : > { %v574_v47 = vmax.f32 %v571_v46, 1e-24 }
 0x2b7   : > { %774 = vrsqrt.f32 %v574_v47 }
 0x2b8   : > { %v573_v48 = vpop.xlane.xlu0 %572 }
 0x2b9   : > { %v575_v49 = vmax.f32 %v573_v48, 1e-24 }
 0x2bb   : > { %776 = vrsqrt.f32 %v575_v49 }
 0x2c1   : > { %v775_v50 = vpop.eup %774 }
 0x2c2   : > { %v578_v51 = vmul.f32 %v775_v50, %v566_v39 }
 0x2c4   : > { %v580_v52 = vmul.f32 %v578_v51, %v578_v51 }
 0x2c5   : > { %v777_v53 = vpop.eup %776 }
 0x2c6   : > { %582 = vadd.xlane.f32.xlu1 %v580_v52  ;;  %v579_v54 = vmul.f32 %v777_v53, %v567_v42 }
 0x2c8   : > { %v581_v55 = vmul.f32 %v579_v54, %v579_v54 }
 0x2ca   : > { %584 = vadd.xlane.f32.xlu0 %v581_v55 }
 0x353   : > { %v583_v56 = vpop.xlane.xlu1 %582 }
 0x357   : > { %v585_v57 = vpop.xlane.xlu0 %584 }
 0x358   : > { %v586_v58 = vadd.f32 %v585_v57, %v583_v56 }
 0x35a   : > { %v587_v59 = vrot.slane %v586_v58, 4 }
 0x35c   : > { %v588_v60 = vadd.f32 %v587_v59, %v586_v58 }
 0x35e   : > { %v589_v61 = vrot.slane %v588_v60, 2 }
 0x360   : > { %v590_v62 = vadd.f32 %v589_v61, %v588_v60 }
 0x362   : > { %v591_v63 = vrot.slane %v590_v62, 1 }
 0x364   : > { %v592_v0 = vadd.f32 %v591_v63, %v590_v62 }
 0x366   : > { %v593_v1 = vmax.f32 %v592_v0, 1e-24 }
 0x368   : > { %778 = vrsqrt.f32 %v593_v1 }
 0x372   : > { %v779_v2 = vpop.eup %778 }
 0x373   : > { %v595_v3 = vmul.f32 %v779_v2, %v578_v51  ;;  %v596_v4 = vmul.f32 %v779_v2, %v579_v54 }
 0x375   : > { %v694_v5 = vpack.c.bf16 %v596_v4, %v595_v3 }
 0x377   : > { %695 = vst [vmem:[%s319_s19] sm:$0xff] %v694_v5  }
 0x378 PF: > { %s18_s27 = sadd.s32 1, %s786_s27  }
 0x379   : > { %p15_p4 = scmp.ge.s32.totalorder %s18_s27, 10  }
 0x37b   :  { %17 = sbr.rel (!%p15_p4) target bundleno = 1 (0x1), region = 85 }

// kernel: netvlad_mask_forward.5
= control target key start
LH: loop header
LB: loop body
LE: loop exit
PB: predicated region body
PF: predicated region fallthrough
CT: control target
= control target key end

     0   :  { %s2681_s0 = inlined_call_operand.vmem [shape: bf16[8,2048], index: 0, kind: input, shape index: {}]   ;;  %s2682_s1 = inlined_call_operand.vmem [shape: bf16[2048,128], index: 1, kind: input, shape index: {}]   ;;  %s2683_s2 = inlined_call_operand.vmem [shape: f32[1,128], index: 2, kind: input, shape index: {}]   ;;  %s2684_s3 = inlined_call_operand.vmem [shape: f32[1,128], index: 3, kind: input, shape index: {}]   ;;  %s2685_s4 = inlined_call_operand.vmem [shape: bf16[128,128], index: 4, kind: input, shape index: {}]   ;;  %s2686_s5 = inlined_call_operand.vmem [shape: f32[1,128], index: 5, kind: input, shape index: {}]   ;;  %s2687_s6 = inlined_call_operand.vmem [shape: f32[1,128], index: 6, kind: input, shape index: {}]   ;;  %s2688_s7 = inlined_call_operand.hbm [shape: f32[8,128], index: 7, kind: output, shape index: {}]  }
   0x1   :  { %v1998_v0 = vld [vmem:[%s2682_s1 + $0x40] sm:$0xff]   ;;  %v2002_v4 = vld [vmem:[%s2682_s1 + $0x48] sm:$0xff]   ;;  %v2006_v8 = vld [vmem:[%s2682_s1 + $0x50] sm:$0xff]  }
   0x2   :  { %v1999_v1 = vld [vmem:[%s2682_s1 + $0xc0] sm:$0xff]   ;;  %1790 = vmatprep.subr.bf16.mxu0 %v1998_v0  ;;  %v2003_v5 = vld [vmem:[%s2682_s1 + $0xc8] sm:$0xff]   ;;  %v2007_v9 = vld [vmem:[%s2682_s1 + $0xd0] sm:$0xff]  }
   0x3   :  { %v2000_v2 = vld [vmem:[%s2682_s1] sm:$0xff]   ;;  %1812 = vmatprep.subr.bf16.mxu1 %v1999_v1  ;;  %v2004_v6 = vld [vmem:[%s2682_s1 + $0x8] sm:$0xff]   ;;  %v2008_v10 = vld [vmem:[%s2682_s1 + $0x10] sm:$0xff]  }
   0x4   :  { %v2001_v3 = vld [vmem:[%s2682_s1 + $0x80] sm:$0xff]   ;;  %1791 = vmatpush3.bf16.msra.mxu0 %v2000_v2  ;;  %v2005_v7 = vld [vmem:[%s2682_s1 + $0x88] sm:$0xff]   ;;  %v2009_v11 = vld [vmem:[%s2682_s1 + $0x90] sm:$0xff]  }
   0x5   :  { %1813 = vmatpush3.bf16.msra.mxu1 %v2001_v3  ;;  %1792 = vmatprep.subr.bf16.mxu0 %v2002_v4  ;;  %v2010_v12 = vld [vmem:[%s2682_s1 + $0x58] sm:$0xff]   ;;  %v2014_v16 = vld [vmem:[%s2682_s1 + $0x60] sm:$0xff]   ;;  %v2018_v20 = vld [vmem:[%s2682_s1 + $0x68] sm:$0xff]  }
   0x6   :  { %1814 = vmatprep.subr.bf16.mxu1 %v2003_v5  ;;  %v2011_v13 = vld [vmem:[%s2682_s1 + $0xd8] sm:$0xff]   ;;  %v2015_v17 = vld [vmem:[%s2682_s1 + $0xe0] sm:$0xff]   ;;  %v2019_v21 = vld [vmem:[%s2682_s1 + $0xe8] sm:$0xff]  }
   0x7   :  { %v2012_v14 = vld [vmem:[%s2682_s1 + $0x18] sm:$0xff]   ;;  %v2016_v18 = vld [vmem:[%s2682_s1 + $0x20] sm:$0xff]   ;;  %v2020_v22 = vld [vmem:[%s2682_s1 + $0x28] sm:$0xff]  }
   0x8   :  { %1793 = vmatpush3.bf16.msra.mxu0 %v2004_v6  ;;  %v2013_v15 = vld [vmem:[%s2682_s1 + $0x98] sm:$0xff]   ;;  %v2017_v19 = vld [vmem:[%s2682_s1 + $0xa0] sm:$0xff]   ;;  %v2021_v23 = vld [vmem:[%s2682_s1 + $0xa8] sm:$0xff]  }
   0x9   :  { %1815 = vmatpush3.bf16.msra.mxu1 %v2005_v7  ;;  %1794 = vmatprep.subr.bf16.mxu0 %v2006_v8  ;;  %v2022_v24 = vld [vmem:[%s2682_s1 + $0x70] sm:$0xff]   ;;  %v2026_v28 = vld [vmem:[%s2682_s1 + $0x78] sm:$0xff]   ;;  %v28_v32 = vld [vmem:[%s2681_s0] sm:$0xff] }
   0xa   :  { %1816 = vmatprep.subr.bf16.mxu1 %v2007_v9  ;;  %v2023_v25 = vld [vmem:[%s2682_s1 + $0xf0] sm:$0xff]   ;;  %v2027_v29 = vld [vmem:[%s2682_s1 + $0xf8] sm:$0xff]   ;;  %v29_v33 = vld [vmem:[%s2681_s0 + $0x8] sm:$0xff]  ;;  %v1633_v34 = vcombine.low %v28_v32, %v28_v32  ;;  %v1634_v35 = vcombine.high %v28_v32, %v28_v32 }
   0xb   :  { %v2024_v26 = vld [vmem:[%s2682_s1 + $0x30] sm:$0xff]   ;;  %v2028_v30 = vld [vmem:[%s2682_s1 + $0x38] sm:$0xff]   ;;  %v1635_v36 = vcombine.low %v29_v33, %v29_v33  ;;  %v1636_v37 = vcombine.high %v29_v33, %v29_v33  ;;  %v2034_v38 = vld [vmem:[%s2682_s1 + $0x140] sm:$0xff]  }
   0xc   :  { %1795 = vmatpush3.bf16.msra.mxu0 %v2008_v10  ;;  %v2025_v27 = vld [vmem:[%s2682_s1 + $0xb0] sm:$0xff]   ;;  %v2029_v31 = vld [vmem:[%s2682_s1 + $0xb8] sm:$0xff]   ;;  %v2035_v39 = vld [vmem:[%s2682_s1 + $0x1c0] sm:$0xff]   ;;  %1148 = vmatprep.mubr.bf16.mxu0 %v1634_v35 }
   0xd   :  { %1817 = vmatpush3.bf16.msra.mxu1 %v2009_v11  ;;  %1796 = vmatprep.subr.bf16.mxu0 %v2010_v12  ;;  %v2036_v40 = vld [vmem:[%s2682_s1 + $0x100] sm:$0xff]   ;;  %v2038_v42 = vld [vmem:[%s2682_s1 + $0x148] sm:$0xff]   ;;  %v2042_v46 = vld [vmem:[%s2682_s1 + $0x150] sm:$0xff]  }
   0xe   :  { %1818 = vmatprep.subr.bf16.mxu1 %v2011_v13  ;;  %1188 = vmatprep.mubr.bf16.mxu1 %v1636_v37  ;;  %v2037_v41 = vld [vmem:[%s2682_s1 + $0x180] sm:$0xff]   ;;  %v2039_v43 = vld [vmem:[%s2682_s1 + $0x1c8] sm:$0xff]   ;;  %v2043_v47 = vld [vmem:[%s2682_s1 + $0x1d0] sm:$0xff]  }
   0xf   :  { %v2040_v44 = vld [vmem:[%s2682_s1 + $0x108] sm:$0xff]   ;;  %v2044_v48 = vld [vmem:[%s2682_s1 + $0x110] sm:$0xff]   ;;  %v2046_v50 = vld [vmem:[%s2682_s1 + $0x158] sm:$0xff]  }
  0x10   :  { %1797 = vmatpush3.bf16.msra.mxu0 %v2012_v14  ;;  %v2041_v45 = vld [vmem:[%s2682_s1 + $0x188] sm:$0xff]   ;;  %v2045_v49 = vld [vmem:[%s2682_s1 + $0x190] sm:$0xff]   ;;  %v2047_v51 = vld [vmem:[%s2682_s1 + $0x1d8] sm:$0xff]  }
  0x11   :  { %1819 = vmatpush3.bf16.msra.mxu1 %v2013_v15  ;;  %1798 = vmatprep.subr.bf16.mxu0 %v2014_v16  ;;  %v2048_v52 = vld [vmem:[%s2682_s1 + $0x118] sm:$0xff]   ;;  %v2050_v54 = vld [vmem:[%s2682_s1 + $0x160] sm:$0xff]   ;;  %v2054_v58 = vld [vmem:[%s2682_s1 + $0x168] sm:$0xff]  }
  0x12   :  { %1820 = vmatprep.subr.bf16.mxu1 %v2015_v17  ;;  %v2049_v53 = vld [vmem:[%s2682_s1 + $0x198] sm:$0xff]   ;;  %v2051_v55 = vld [vmem:[%s2682_s1 + $0x1e0] sm:$0xff]   ;;  %v2055_v59 = vld [vmem:[%s2682_s1 + $0x1e8] sm:$0xff]  }
  0x13   :  { %v2052_v56 = vld [vmem:[%s2682_s1 + $0x120] sm:$0xff]   ;;  %v2056_v60 = vld [vmem:[%s2682_s1 + $0x128] sm:$0xff]   ;;  %v2058_v62 = vld [vmem:[%s2682_s1 + $0x170] sm:$0xff]  }
  0x14   :  { %1799 = vmatpush3.bf16.msra.mxu0 %v2016_v18  ;;  %v2053_v57 = vld [vmem:[%s2682_s1 + $0x1a0] sm:$0xff]   ;;  %v2057_v61 = vld [vmem:[%s2682_s1 + $0x1a8] sm:$0xff]   ;;  %v2059_v63 = vld [vmem:[%s2682_s1 + $0x1f0] sm:$0xff]  }
  0x15   :  { %1821 = vmatpush3.bf16.msra.mxu1 %v2017_v19  ;;  %1800 = vmatprep.subr.bf16.mxu0 %v2018_v20  ;;  %v2060_v0 = vld [vmem:[%s2682_s1 + $0x130] sm:$0xff]   ;;  %v2062_v2 = vld [vmem:[%s2682_s1 + $0x178] sm:$0xff]   ;;  %v2070_v12 = vld [vmem:[%s2682_s1 + $0x240] sm:$0xff]  }
  0x16   :  { %1822 = vmatprep.subr.bf16.mxu1 %v2019_v21  ;;  %v2061_v1 = vld [vmem:[%s2682_s1 + $0x1b0] sm:$0xff]   ;;  %v2063_v3 = vld [vmem:[%s2682_s1 + $0x1f8] sm:$0xff]   ;;  %v2071_v13 = vld [vmem:[%s2682_s1 + $0x2c0] sm:$0xff]  }
  0x17   :  { %v2064_v4 = vld [vmem:[%s2682_s1 + $0x138] sm:$0xff]   ;;  %v30_v6 = vld [vmem:[%s2681_s0 + $0x10] sm:$0xff]  ;;  %v2072_v14 = vld [vmem:[%s2682_s1 + $0x200] sm:$0xff]  }
  0x18   :  { %1801 = vmatpush3.bf16.msra.mxu0 %v2020_v22  ;;  %v2065_v5 = vld [vmem:[%s2682_s1 + $0x1b8] sm:$0xff]   ;;  %v1637_v7 = vcombine.low %v30_v6, %v30_v6  ;;  %v1638_v8 = vcombine.high %v30_v6, %v30_v6  ;;  %v2073_v15 = vld [vmem:[%s2682_s1 + $0x280] sm:$0xff]   ;;  %v2074_v16 = vld [vmem:[%s2682_s1 + $0x248] sm:$0xff]  }
  0x19   :  { %1823 = vmatpush3.bf16.msra.mxu1 %v2021_v23  ;;  %1802 = vmatprep.subr.bf16.mxu0 %v2022_v24  ;;  %v31_v9 = vld [vmem:[%s2681_s0 + $0x18] sm:$0xff]  ;;  %v2075_v17 = vld [vmem:[%s2682_s1 + $0x2c8] sm:$0xff]   ;;  %v2078_v20 = vld [vmem:[%s2682_s1 + $0x250] sm:$0xff]  }
  0x1a   :  { %1824 = vmatprep.subr.bf16.mxu1 %v2023_v25  ;;  %v1639_v10 = vcombine.low %v31_v9, %v31_v9  ;;  %v1640_v11 = vcombine.high %v31_v9, %v31_v9  ;;  %v2076_v18 = vld [vmem:[%s2682_s1 + $0x208] sm:$0xff]   ;;  %v2079_v21 = vld [vmem:[%s2682_s1 + $0x2d0] sm:$0xff]   ;;  %v2082_v24 = vld [vmem:[%s2682_s1 + $0x258] sm:$0xff]  }
  0x1b   :  { %v2077_v19 = vld [vmem:[%s2682_s1 + $0x288] sm:$0xff]   ;;  %v2080_v22 = vld [vmem:[%s2682_s1 + $0x210] sm:$0xff]   ;;  %v2083_v25 = vld [vmem:[%s2682_s1 + $0x2d8] sm:$0xff]  }
  0x1c   :  { %1803 = vmatpush3.bf16.msra.mxu0 %v2024_v26  ;;  %v2081_v23 = vld [vmem:[%s2682_s1 + $0x290] sm:$0xff]   ;;  %v2084_v26 = vld [vmem:[%s2682_s1 + $0x218] sm:$0xff]   ;;  %v2090_v32 = vld [vmem:[%s2682_s1 + $0x268] sm:$0xff]  }
  0x1d   :  { %1825 = vmatpush3.bf16.msra.mxu1 %v2025_v27  ;;  %1804 = vmatprep.subr.bf16.mxu0 %v2026_v28  ;;  %v2085_v27 = vld [vmem:[%s2682_s1 + $0x298] sm:$0xff]   ;;  %v2086_v28 = vld [vmem:[%s2682_s1 + $0x260] sm:$0xff]   ;;  %v2091_v33 = vld [vmem:[%s2682_s1 + $0x2e8] sm:$0xff]  }
  0x1e   :  { %1826 = vmatprep.subr.bf16.mxu1 %v2027_v29  ;;  %v2087_v29 = vld [vmem:[%s2682_s1 + $0x2e0] sm:$0xff]   ;;  %v2093_v35 = vld [vmem:[%s2682_s1 + $0x2a8] sm:$0xff]   ;;  %v2095_v37 = vld [vmem:[%s2682_s1 + $0x2f0] sm:$0xff]  }
  0x1f   :  { %v2126_v6 = vld [vmem:[%s2682_s1 + $0x368] sm:$0xff]  }
  0x20   :  { %1805 = vmatpush3.bf16.msra.mxu0 %v2028_v30  ;;  %v2088_v30 = vld [vmem:[%s2682_s1 + $0x220] sm:$0xff]   ;;  %v2129_v9 = vld [vmem:[%s2682_s1 + $0x3a8] sm:$0xff]  }
  0x21   :  { %1827 = vmatpush3.bf16.msra.mxu1 %v2029_v31  ;;  %1834 = vmatprep.subr.bf16.mxu0 %v2034_v38  ;;  %v2089_v31 = vld [vmem:[%s2682_s1 + $0x2a0] sm:$0xff]   ;;  %v2096_v38 = vld [vmem:[%s2682_s1 + $0x230] sm:$0xff]  }
  0x22   :  { %1856 = vmatprep.subr.bf16.mxu1 %v2035_v39  ;;  %v2097_v39 = vld [vmem:[%s2682_s1 + $0x2b0] sm:$0xff]  }
  0x23   :  { %1149 = vmatmul.mubr.bf16.vlgmr.msra.gmra.mrb[0].mxu0 %v1633_v34  ;;  %v2092_v34 = vld [vmem:[%s2682_s1 + $0x228] sm:$0xff]  }
  0x24   :  { %1189 = vmatmul.mubr.bf16.vlgmr.msra.gmra.mrb[0].mxu1 %v1635_v36  ;;  %1835 = vmatpush3.bf16.msra.mxu0 %v2036_v40  ;;  %v2094_v36 = vld [vmem:[%s2682_s1 + $0x270] sm:$0xff]   ;;  %v2098_v40 = vld [vmem:[%s2682_s1 + $0x278] sm:$0xff]  }
  0x25   :  { %1857 = vmatpush3.bf16.msra.mxu1 %v2037_v41  ;;  %1836 = vmatprep.subr.bf16.mxu0 %v2038_v42  ;;  %v2099_v41 = vld [vmem:[%s2682_s1 + $0x2f8] sm:$0xff]  }
  0x26   :  { %1858 = vmatprep.subr.bf16.mxu1 %v2039_v43  ;;  %1228 = vmatprep.mubr.bf16.mxu0 %v1638_v8  ;;  %v2100_v42 = vld [vmem:[%s2682_s1 + $0x238] sm:$0xff]   ;;  %v2128_v8 = vld [vmem:[%s2682_s1 + $0x328] sm:$0xff]  }
  0x27   :  { %1268 = vmatprep.mubr.bf16.mxu1 %v1640_v11  ;;  %v2101_v43 = vld [vmem:[%s2682_s1 + $0x2b8] sm:$0xff]   ;;  %v2131_v11 = vld [vmem:[%s2682_s1 + $0x3f0] sm:$0xff]  }
  0x28   :  { %1837 = vmatpush3.bf16.msra.mxu0 %v2040_v44  ;;  %v32_v44 = vld [vmem:[%s2681_s0 + $0x20] sm:$0xff] }
  0x29   :  { %1859 = vmatpush3.bf16.msra.mxu1 %v2041_v45  ;;  %1838 = vmatprep.subr.bf16.mxu0 %v2042_v46  ;;  %v33_v45 = vld [vmem:[%s2681_s0 + $0x28] sm:$0xff]  ;;  %v1641_v46 = vcombine.low %v32_v44, %v32_v44 }
  0x2a   :  { %1860 = vmatprep.subr.bf16.mxu1 %v2043_v47  ;;  %v1642_v47 = vcombine.high %v32_v44, %v32_v44 }
  0x2c   :  { %1839 = vmatpush3.bf16.msra.mxu0 %v2044_v48  ;;  %v1643_v48 = vcombine.low %v33_v45, %v33_v45 }
  0x2d   :  { %1861 = vmatpush3.bf16.msra.mxu1 %v2045_v49  ;;  %1840 = vmatprep.subr.bf16.mxu0 %v2046_v50  ;;  %v1644_v49 = vcombine.high %v33_v45, %v33_v45  ;;  %v2106_v50 = vld [vmem:[%s2682_s1 + $0x340] sm:$0xff]  }
  0x2e   :  { %1862 = vmatprep.subr.bf16.mxu1 %v2047_v51  ;;  %v2107_v51 = vld [vmem:[%s2682_s1 + $0x3c0] sm:$0xff]  }
  0x30   :  { %1841 = vmatpush3.bf16.msra.mxu0 %v2048_v52  ;;  %v2108_v52 = vld [vmem:[%s2682_s1 + $0x300] sm:$0xff]  }
  0x31   :  { %1863 = vmatpush3.bf16.msra.mxu1 %v2049_v53  ;;  %1842 = vmatprep.subr.bf16.mxu0 %v2050_v54  ;;  %v2109_v53 = vld [vmem:[%s2682_s1 + $0x380] sm:$0xff]   ;;  %v2110_v54 = vld [vmem:[%s2682_s1 + $0x348] sm:$0xff]  }
  0x32   :  { %1864 = vmatprep.subr.bf16.mxu1 %v2051_v55  ;;  %v2111_v55 = vld [vmem:[%s2682_s1 + $0x3c8] sm:$0xff]  }
  0x34   :  { %1843 = vmatpush3.bf16.msra.mxu0 %v2052_v56  ;;  %v2112_v56 = vld [vmem:[%s2682_s1 + $0x308] sm:$0xff]  }
  0x35   :  { %1865 = vmatpush3.bf16.msra.mxu1 %v2053_v57  ;;  %1844 = vmatprep.subr.bf16.mxu0 %v2054_v58  ;;  %v2113_v57 = vld [vmem:[%s2682_s1 + $0x388] sm:$0xff]   ;;  %v2114_v58 = vld [vmem:[%s2682_s1 + $0x350] sm:$0xff]  }
  0x36   :  { %1866 = vmatprep.subr.bf16.mxu1 %v2055_v59  ;;  %v2115_v59 = vld [vmem:[%s2682_s1 + $0x3d0] sm:$0xff]  }
  0x38   :  { %1845 = vmatpush3.bf16.msra.mxu0 %v2056_v60  ;;  %v2116_v60 = vld [vmem:[%s2682_s1 + $0x310] sm:$0xff]  }
  0x39   :  { %1867 = vmatpush3.bf16.msra.mxu1 %v2057_v61  ;;  %1846 = vmatprep.subr.bf16.mxu0 %v2058_v62  ;;  %v2117_v61 = vld [vmem:[%s2682_s1 + $0x390] sm:$0xff]   ;;  %v2118_v62 = vld [vmem:[%s2682_s1 + $0x358] sm:$0xff]  }
  0x3a   :  { %1868 = vmatprep.subr.bf16.mxu1 %v2059_v63  ;;  %v2119_v63 = vld [vmem:[%s2682_s1 + $0x3d8] sm:$0xff]  }
  0x3c   :  { %1847 = vmatpush3.bf16.msra.mxu0 %v2060_v0  ;;  %v2120_v0 = vld [vmem:[%s2682_s1 + $0x318] sm:$0xff]  }
  0x3d   :  { %1869 = vmatpush3.bf16.msra.mxu1 %v2061_v1  ;;  %1848 = vmatprep.subr.bf16.mxu0 %v2062_v2  ;;  %v2121_v1 = vld [vmem:[%s2682_s1 + $0x398] sm:$0xff]   ;;  %v2122_v2 = vld [vmem:[%s2682_s1 + $0x360] sm:$0xff]  }
  0x3e   :  { %1870 = vmatprep.subr.bf16.mxu1 %v2063_v3  ;;  %v2123_v3 = vld [vmem:[%s2682_s1 + $0x3e0] sm:$0xff]  }
  0x40   :  { %1849 = vmatpush3.bf16.msra.mxu0 %v2064_v4  ;;  %v2124_v4 = vld [vmem:[%s2682_s1 + $0x320] sm:$0xff]  }
  0x41   :  { %1871 = vmatpush3.bf16.msra.mxu1 %v2065_v5  ;;  %1878 = vmatprep.subr.bf16.mxu0 %v2070_v12  ;;  %v2125_v5 = vld [vmem:[%s2682_s1 + $0x3a0] sm:$0xff]   ;;  %v2132_v12 = vld [vmem:[%s2682_s1 + $0x330] sm:$0xff]  }
  0x42   :  { %1900 = vmatprep.subr.bf16.mxu1 %v2071_v13  ;;  %v2133_v13 = vld [vmem:[%s2682_s1 + $0x3b0] sm:$0xff]  }
  0x43   :  { %1229 = vmatmul.mubr.bf16.vlgmr.msra.gmra.mrb[4].mxu0 %v1637_v7  ;;  %v2127_v7 = vld [vmem:[%s2682_s1 + $0x3e8] sm:$0xff]  }
  0x44   :  { %1269 = vmatmul.mubr.bf16.vlgmr.msra.gmra.mrb[4].mxu1 %v1639_v10  ;;  %1879 = vmatpush3.bf16.msra.mxu0 %v2072_v14  ;;  %v2130_v10 = vld [vmem:[%s2682_s1 + $0x370] sm:$0xff]   ;;  %v2134_v14 = vld [vmem:[%s2682_s1 + $0x378] sm:$0xff]  }
  0x45   :  { %1901 = vmatpush3.bf16.msra.mxu1 %v2073_v15  ;;  %1880 = vmatprep.subr.bf16.mxu0 %v2074_v16  ;;  %v2135_v15 = vld [vmem:[%s2682_s1 + $0x3f8] sm:$0xff]  }
  0x46   :  { %1902 = vmatprep.subr.bf16.mxu1 %v2075_v17  ;;  %1308 = vmatprep.mubr.bf16.mxu0 %v1642_v47  ;;  %v2136_v16 = vld [vmem:[%s2682_s1 + $0x338] sm:$0xff]  }
  0x47   :  { %1348 = vmatprep.mubr.bf16.mxu1 %v1644_v49  ;;  %v2137_v17 = vld [vmem:[%s2682_s1 + $0x3b8] sm:$0xff]  }
  0x48   :  { %1881 = vmatpush3.bf16.msra.mxu0 %v2076_v18  ;;  %v34_v18 = vld [vmem:[%s2681_s0 + $0x30] sm:$0xff] }
  0x49   :  { %1903 = vmatpush3.bf16.msra.mxu1 %v2077_v19  ;;  %1882 = vmatprep.subr.bf16.mxu0 %v2078_v20  ;;  %v35_v19 = vld [vmem:[%s2681_s0 + $0x38] sm:$0xff]  ;;  %v1645_v20 = vcombine.low %v34_v18, %v34_v18 }
  0x4a   :  { %1904 = vmatprep.subr.bf16.mxu1 %v2079_v21  ;;  %v1646_v21 = vcombine.high %v34_v18, %v34_v18 }
  0x4c   :  { %1883 = vmatpush3.bf16.msra.mxu0 %v2080_v22  ;;  %v1647_v22 = vcombine.low %v35_v19, %v35_v19 }
  0x4d   :  { %1905 = vmatpush3.bf16.msra.mxu1 %v2081_v23  ;;  %1884 = vmatprep.subr.bf16.mxu0 %v2082_v24  ;;  %v1648_v23 = vcombine.high %v35_v19, %v35_v19 }
  0x4e   :  { %1906 = vmatprep.subr.bf16.mxu1 %v2083_v25 }
  0x50   :  { %1885 = vmatpush3.bf16.msra.mxu0 %v2084_v26 }
  0x51   :  { %1907 = vmatpush3.bf16.msra.mxu1 %v2085_v27  ;;  %1886 = vmatprep.subr.bf16.mxu0 %v2086_v28 }
  0x52   :  { %1908 = vmatprep.subr.bf16.mxu1 %v2087_v29 }
  0x54   :  { %1887 = vmatpush3.bf16.msra.mxu0 %v2088_v30 }
  0x55   :  { %1909 = vmatpush3.bf16.msra.mxu1 %v2089_v31  ;;  %1888 = vmatprep.subr.bf16.mxu0 %v2090_v32 }
  0x56   :  { %1910 = vmatprep.subr.bf16.mxu1 %v2091_v33 }
  0x58   :  { %1889 = vmatpush3.bf16.msra.mxu0 %v2092_v34 }
  0x59   :  { %1911 = vmatpush3.bf16.msra.mxu1 %v2093_v35  ;;  %1890 = vmatprep.subr.bf16.mxu0 %v2094_v36 }
  0x5a   :  { %1912 = vmatprep.subr.bf16.mxu1 %v2095_v37 }
  0x5c   :  { %1891 = vmatpush3.bf16.msra.mxu0 %v2096_v38 }
  0x5d   :  { %1913 = vmatpush3.bf16.msra.mxu1 %v2097_v39  ;;  %1892 = vmatprep.subr.bf16.mxu0 %v2098_v40 }
  0x5e   :  { %1914 = vmatprep.subr.bf16.mxu1 %v2099_v41 }
  0x60   :  { %1893 = vmatpush3.bf16.msra.mxu0 %v2100_v42 }
  0x61   :  { %1915 = vmatpush3.bf16.msra.mxu1 %v2101_v43  ;;  %1922 = vmatprep.subr.bf16.mxu0 %v2106_v50 }
  0x62   :  { %1944 = vmatprep.subr.bf16.mxu1 %v2107_v51 }
  0x63   :  { %1309 = vmatmul.mubr.bf16.vlgmr.msra.gmra.mrb[8].mxu0 %v1641_v46 }
  0x64   :  { %1349 = vmatmul.mubr.bf16.vlgmr.msra.gmra.mrb[8].mxu1 %v1643_v48  ;;  %1923 = vmatpush3.bf16.msra.mxu0 %v2108_v52 }
  0x65   :  { %1945 = vmatpush3.bf16.msra.mxu1 %v2109_v53  ;;  %1924 = vmatprep.subr.bf16.mxu0 %v2110_v54 }
  0x66   :  { %1946 = vmatprep.subr.bf16.mxu1 %v2111_v55  ;;  %1388 = vmatprep.mubr.bf16.mxu0 %v1646_v21 }
  0x67   :  { %1428 = vmatprep.mubr.bf16.mxu1 %v1648_v23 }
  0x68   :  { %1925 = vmatpush3.bf16.msra.mxu0 %v2112_v56 }
  0x69   :  { %1947 = vmatpush3.bf16.msra.mxu1 %v2113_v57  ;;  %1926 = vmatprep.subr.bf16.mxu0 %v2114_v58 }
  0x6a   :  { %1948 = vmatprep.subr.bf16.mxu1 %v2115_v59 }
  0x6c   :  { %1927 = vmatpush3.bf16.msra.mxu0 %v2116_v60 }
  0x6d   :  { %1949 = vmatpush3.bf16.msra.mxu1 %v2117_v61  ;;  %1928 = vmatprep.subr.bf16.mxu0 %v2118_v62 }
  0x6e   :  { %1950 = vmatprep.subr.bf16.mxu1 %v2119_v63 }
  0x70   :  { %1929 = vmatpush3.bf16.msra.mxu0 %v2120_v0 }
  0x71   :  { %1951 = vmatpush3.bf16.msra.mxu1 %v2121_v1  ;;  %1930 = vmatprep.subr.bf16.mxu0 %v2122_v2 }
  0x72   :  { %1952 = vmatprep.subr.bf16.mxu1 %v2123_v3 }
  0x74   :  { %1931 = vmatpush3.bf16.msra.mxu0 %v2124_v4 }
  0x75   :  { %1953 = vmatpush3.bf16.msra.mxu1 %v2125_v5  ;;  %1932 = vmatprep.subr.bf16.mxu0 %v2126_v6 }
  0x76   :  { %1954 = vmatprep.subr.bf16.mxu1 %v2127_v7 }
  0x78   :  { %1933 = vmatpush3.bf16.msra.mxu0 %v2128_v8 }
  0x79   :  { %1955 = vmatpush3.bf16.msra.mxu1 %v2129_v9  ;;  %1934 = vmatprep.subr.bf16.mxu0 %v2130_v10 }
  0x7a   :  { %1956 = vmatprep.subr.bf16.mxu1 %v2131_v11 }
  0x7c   :  { %1935 = vmatpush3.bf16.msra.mxu0 %v2132_v12 }
  0x7d   :  { %1957 = vmatpush3.bf16.msra.mxu1 %v2133_v13  ;;  %1936 = vmatprep.subr.bf16.mxu0 %v2134_v14 }
  0x7e   :  { %1958 = vmatprep.subr.bf16.mxu1 %v2135_v15 }
  0x80   :  { %1937 = vmatpush3.bf16.msra.mxu0 %v2136_v16 }
  0x81   :  { %1959 = vmatpush3.bf16.msra.mxu1 %v2137_v17 }
  0x83   :  { %1389 = vmatmul.mubr.bf16.vlgmr.msra.gmra.mrb[12].mxu0 %v1645_v20 }
  0x84   :  { %1429 = vmatmul.mubr.bf16.vlgmr.msra.gmra.mrb[12].mxu1 %v1647_v22 }
  0x85   :  { %12 = vsyncpa [#allocation3], 0  ;;  %v2142_v24 = vld [vmem:[%s2685_s4] sm:$0xff]   ;;  %v2182_v27 = vmov 0.0   ;;  %v2143_v36 = vld [vmem:[%s2685_s4 + $0x8] sm:$0xff]   ;;  %vm2183_vm0 = vmmov 0  }
  0x86   :  { %1975 = vmatprep.subr.bf16.mxu0 %v2182_v27  ;;  %v2144_v38 = vld [vmem:[%s2685_s4 + $0x10] sm:$0xff]   ;;  %v2145_v39 = vld [vmem:[%s2685_s4 + $0x18] sm:$0xff]   ;;  %v2146_v40 = vld [vmem:[%s2685_s4 + $0x20] sm:$0xff]   ;;  %1991 = vmatprep.mubr.msk.bf16.mxu0 %vm2183_vm0, %v2182_v27  ;;  %s2184_s16 = smov [#allocation2]  }
  0x87   :  { %1976 = vmatpush3.bf16.msra.mxu0 %v2142_v24  ;;  %v2147_v41 = vld [vmem:[%s2685_s4 + $0x28] sm:$0xff]   ;;  %v2148_v42 = vld [vmem:[%s2685_s4 + $0x30] sm:$0xff]   ;;  %v2149_v43 = vld [vmem:[%s2685_s4 + $0x38] sm:$0xff]   ;;  %s1625_s17 = sshll.u32 %s2184_s16, 4  ;;  %s1626_s17 = int_to_ptr.vmem [resolvable:$true] %s1625_s17 }
  0x88   :  { %1977 = vmatprep.subr.bf16.mxu0 %v2182_v27  ;;  %s2158_s18 = scalar_lea.vmem %s1626_s17, 128  ;;  %p2163_p1 = scmp.lt.s32.totalorder %s1626_s17, %s1626_s17 }
  0x89   :  { %p2159_p0 = scmp.ne.s32.totalorder %s1626_s17, %s2158_s18  ;;  %p2164_p2 = scmp.lt.s32.totalorder %s2158_s18, %s2158_s18 }
  0x8b   :  { %1978 = vmatpush3.bf16.msra.mxu0 %v2143_v36  ;;  %v1778_v36 = vld [vmem:[%s2684_s3] ss:$0 sm:$0xff]  ;;  %p2165_p3 = por %p2164_p2, %p2163_p1 }
  0x8c   :  { %1979 = vmatprep.subr.bf16.mxu0 %v2182_v27 }
  0x8d   :  { %p2166_p4 = pnand %p2165_p3, %p2159_p0 }
  0x8f   :  { %1980 = vmatpush3.bf16.msra.mxu0 %v2144_v38 }
  0x90   :  { %1981 = vmatprep.subr.bf16.mxu0 %v2182_v27 }
  0x93   :  { %1982 = vmatpush3.bf16.msra.mxu0 %v2145_v39 }
  0x94   :  { %1983 = vmatprep.subr.bf16.mxu0 %v2182_v27 }
  0x97   :  { %1984 = vmatpush3.bf16.msra.mxu0 %v2146_v40 }
  0x98   :  { %1985 = vmatprep.subr.bf16.mxu0 %v2182_v27 }
  0x9b   :  { %1986 = vmatpush3.bf16.msra.mxu0 %v2147_v41 }
  0x9c   :  { %1987 = vmatprep.subr.bf16.mxu0 %v2182_v27 }
  0x9f   :  { %1988 = vmatpush3.bf16.msra.mxu0 %v2148_v42 }
  0xa0   :  { %1989 = vmatprep.subr.bf16.mxu0 %v2182_v27 }
  0xa3   :  { %1990 = vmatpush3.bf16.msra.mxu0 %v2149_v43 }
  0xf6   :  { %v1806_v25 = vpop.f32.mrb[0].mxu0 }
  0xf7   :  { %v1828_v26 = vpop.f32.mrb[0].mxu1  ;;  %v1807_v28 = vpop.f32.mrb[1].mxu0 }
  0xf8   :  { %v1829_v29 = vpop.f32.mrb[1].mxu1  ;;  %v1808_v30 = vadd.f32 %v1807_v28, %v1806_v25  ;;  %v1809_v32 = vpop.f32.mrb[2].mxu0 }
  0xf9   :  { %v1830_v31 = vadd.f32 %v1829_v29, %v1828_v26  ;;  %v1831_v33 = vpop.f32.mrb[2].mxu1  ;;  %v1810_v34 = vpop.f32.mrb[3].mxu0 }
  0xfa   :  { %v1832_v35 = vpop.f32.mrb[3].mxu1  ;;  %v1777_v34 = vld [vmem:[%s2683_s2] ss:$0 sm:$0xff] }
  0xfb   :  { %v1191_v37 = vadd.f32 %v1830_v31, %v1808_v30 }
 0x116   :  { %v1850_v44 = vpop.f32.mrb[4].mxu0 }
 0x117   :  { %v1872_v45 = vpop.f32.mrb[4].mxu1  ;;  %v1851_v46 = vpop.f32.mrb[5].mxu0 }
 0x118   :  { %v1873_v47 = vpop.f32.mrb[5].mxu1  ;;  %v1852_v48 = vadd.f32 %v1851_v46, %v1850_v44  ;;  %v1853_v50 = vpop.f32.mrb[6].mxu0 }
 0x119   :  { %v1874_v49 = vadd.f32 %v1873_v47, %v1872_v45  ;;  %v1875_v51 = vpop.f32.mrb[6].mxu1  ;;  %v1854_v52 = vpop.f32.mrb[7].mxu0 }
 0x11a   :  { %v1876_v53 = vpop.f32.mrb[7].mxu1  ;;  %v1231_v54 = vadd.f32 %v1852_v48, %v1191_v37 }
 0x11c   :  { %v1271_v55 = vadd.f32 %v1874_v49, %v1231_v54 }
 0x136   :  { %v1894_v56 = vpop.f32.mrb[8].mxu0 }
 0x137   :  { %v1916_v57 = vpop.f32.mrb[8].mxu1  ;;  %v1895_v58 = vpop.f32.mrb[9].mxu0 }
 0x138   :  { %v1896_v59 = vadd.f32 %v1895_v58, %v1894_v56  ;;  %v1917_v60 = vpop.f32.mrb[9].mxu1  ;;  %v1897_v61 = vpop.f32.mrb[10].mxu0 }
 0x139   :  { %v1918_v62 = vadd.f32 %v1917_v60, %v1916_v57  ;;  %v1919_v63 = vpop.f32.mrb[10].mxu1  ;;  %v1898_v0 = vpop.f32.mrb[11].mxu0 }
 0x13a   :  { %v1311_v1 = vadd.f32 %v1896_v59, %v1271_v55  ;;  %v1920_v2 = vpop.f32.mrb[11].mxu1  ;;  %v1788_v0 = vld [vmem:[%s2687_s6] ss:$0 sm:$0xff] }
 0x13c   :  { %v1351_v3 = vadd.f32 %v1918_v62, %v1311_v1  ;;  %v1787_v62 = vld [vmem:[%s2686_s5] ss:$0 sm:$0xff] }
 0x156   :  { %v1938_v4 = vpop.f32.mrb[12].mxu0 }
 0x157   :  { %v1960_v5 = vpop.f32.mrb[12].mxu1  ;;  %v1939_v6 = vpop.f32.mrb[13].mxu0 }
 0x158   :  { %v1940_v7 = vadd.f32 %v1939_v6, %v1938_v4  ;;  %v1961_v8 = vpop.f32.mrb[13].mxu1  ;;  %v1941_v9 = vpop.f32.mrb[14].mxu0 }
 0x159   :  { %v1962_v10 = vadd.f32 %v1961_v8, %v1960_v5  ;;  %v1963_v11 = vpop.f32.mrb[14].mxu1  ;;  %v1942_v12 = vpop.f32.mrb[15].mxu0 }
 0x15a   :  { %v1391_v13 = vadd.f32 %v1940_v7, %v1351_v3  ;;  %v1964_v14 = vpop.f32.mrb[15].mxu1 }
 0x15c   :  { %v1431_v15 = vadd.f32 %v1962_v10, %v1391_v13 }
 0x15e   :  { %v1438_v16 = vrot.slane %v1431_v15, 4 }
 0x160   :  { %v1439_v17 = vadd.f32 %v1438_v16, %v1431_v15 }
 0x162   :  { %v1440_v18 = vrot.slane %v1439_v17, 2 }
 0x164   :  { %v1441_v19 = vadd.f32 %v1440_v18, %v1439_v17 }
 0x166   :  { %v1442_v20 = vrot.slane %v1441_v19, 1 }
 0x168   :  { %v1443_v21 = vadd.f32 %v1442_v20, %v1441_v19 }
 0x16a   :  { %v1444_v22 = vmul.f32 0.125, %v1443_v21 }
 0x16c   :  { %v1445_v23 = vsub.f32 %v1431_v15, %v1444_v22 }
 0x16e   :  { %v1446_v24 = vmul.f32 %v1445_v23, %v1445_v23 }
 0x170   :  { %v1447_v25 = vrot.slane %v1446_v24, 4 }
 0x172   :  { %v1448_v26 = vadd.f32 %v1447_v25, %v1446_v24 }
 0x174   :  { %v1449_v27 = vrot.slane %v1448_v26, 2 }
 0x176   :  { %v1450_v28 = vadd.f32 %v1449_v27, %v1448_v26 }
 0x178   :  { %v1451_v29 = vrot.slane %v1450_v28, 1 }
 0x17a   :  { %v1452_v30 = vadd.f32 %v1451_v29, %v1450_v28 }
 0x17c   :  { %v1453_v31 = vmul.f32 0.125, %v1452_v30 }
 0x17e   :  { %v1454_v32 = vadd.f32 1e-05, %v1453_v31 }
 0x180   :  { %2150 = vrsqrt.f32 %v1454_v32 }
 0x18a   :  { %v2151_v33 = vpop.eup %2150 }
 0x18b   :  { %v1456_v35 = vmul.f32 %v2151_v33, %v1445_v23 }
 0x18d   :  { %v1463_v37 = vmul.f32 %v1777_v34, %v1456_v35 }
 0x18f   :  { %v1470_v38 = vadd.f32 %v1778_v36, %v1463_v37 }
 0x191   :  { %v1471_v39 = vpack.c.bf16 %v1470_v38, %v1470_v38 }
 0x193   :  { %1992 = vmatmul.mubr.bf16.vlgmr.msra.gmra.mrb[16].mxu0 %v1471_v39 }
 0x266   :  { %v1570_v40 = vpop.f32.mrb[16].mxu0 }
 0x267   :  { %v1578_v41 = vrot.slane %v1570_v40, 4  ;;  %v1993_v42 = vpop.f32.mrb[17].mxu0 }
 0x268   :  { %v1573_v43 = vpop.f32.mrb[18].mxu0 }
 0x269   :  { %v1579_v44 = vadd.f32 %v1578_v41, %v1570_v40  ;;  %v1994_v45 = vpop.f32.mrb[19].mxu0 }
 0x26b   :  { %v1580_v46 = vrot.slane %v1579_v44, 2 }
 0x26d   :  { %v1581_v47 = vadd.f32 %v1580_v46, %v1579_v44 }
 0x26f   :  { %v1582_v48 = vrot.slane %v1581_v47, 1 }
 0x271   :  { %v1583_v49 = vadd.f32 %v1582_v48, %v1581_v47 }
 0x273   :  { %v1584_v50 = vmul.f32 0.125, %v1583_v49 }
 0x275   :  { %v1585_v51 = vsub.f32 %v1570_v40, %v1584_v50 }
 0x277   :  { %v1586_v52 = vmul.f32 %v1585_v51, %v1585_v51 }
 0x279   :  { %v1587_v53 = vrot.slane %v1586_v52, 4 }
 0x27b   :  { %v1588_v54 = vadd.f32 %v1587_v53, %v1586_v52 }
 0x27d   :  { %v1589_v55 = vrot.slane %v1588_v54, 2 }
 0x27f   :  { %v1590_v56 = vadd.f32 %v1589_v55, %v1588_v54 }
 0x281   :  { %v1591_v57 = vrot.slane %v1590_v56, 1 }
 0x283   :  { %v1592_v58 = vadd.f32 %v1591_v57, %v1590_v56 }
 0x285   :  { %v1593_v59 = vmul.f32 0.125, %v1592_v58 }
 0x287   :  { %v1594_v60 = vadd.f32 1e-05, %v1593_v59 }
 0x289   :  { %2152 = vrsqrt.f32 %v1594_v60 }
 0x293   :  { %v2153_v61 = vpop.eup %2152 }
 0x294   :  { %v1596_v63 = vmul.f32 %v2153_v61, %v1585_v51 }
 0x296   :  { %v1603_v1 = vmul.f32 %v1787_v62, %v1596_v63 }
 0x298   :  { %v1610_v2 = vadd.f32 %v1788_v0, %v1603_v1 }
 0x29a   :  { %v1789_v3 = vmul.f32 -1.442695, %v1610_v2 }
 0x29c   :  { %2154 = vpow2.f32 %v1789_v3 }
 0x2a6   :  { %v2155_v4 = vpop.eup %2154 }
 0x2a7   :  { %v1614_v5 = vadd.f32 1.0, %v2155_v4 }
 0x2a9   :  { %2156 = vrcp.f32 %v1614_v5 }
 0x2b3   :  { %v2157_v6 = vpop.eup %2156 }
 0x2b4   :  { %v1617_v7 = vmul.f32 %v2157_v6, %v1470_v38 }
 0x2b6   :  { %1618 = vst [vmem:[#allocation2] sm:$0xff] %v1617_v7 }
 0x2b7   :  { %2169 = shalt.err (!%p2166_p4)
}
 0x2b8   :  { %s2170_s19 = scalar_lea.hbm %s2688_s7, 128 }
 0x2b9   :  { %p2171_p5 = scmp.ne.s32.totalorder %s2688_s7, %s2170_s19  ;;  %p2174_p6 = scmp.lt.u32.totalorder %s2170_s19, %s2688_s7 }
 0x2bb   :  { %p2176_p7 = pnand %p2174_p6, %p2171_p5 }
 0x2bd   :  { %2179 = shalt.err (!%p2176_p7)
}
 0x2be   :  { %1628 = dma.vmem_to_hbm [thread:$0]  %s1626_s17, 128, %s2688_s7, [#allocation3]  }
 0x2bf   :  { %2180 = dma.done.wait [#allocation3], 128  }
 0x2c0   :  { %2181 = vsyncadd [#allocation3], 4294967168 }
 0x2c1   :  { %1632 = vsyncpa [#allocation3], 1 }

</bundles_post_ra>
